<compile_context>
chip_gen: v7x
topology: tpu7x:2x2x1
jax: 0.10.0
libtpu: 0.0.40
codegen_flags: <defaults>
</compile_context>

<pallas_src>
import math

import jax
import jax.numpy as jnp
from jax import lax
from jax.experimental import pallas as pl
from jax.experimental.pallas import tpu as pltpu


def _make_kernel(C, block_rows, rows_total, inner_steps, acc_rows, partial_tail):
    """Build the fused dice-stats + CE kernel for static (C, tile) configuration."""

    def kernel(x_ref, t_ref, tp_ref, sq_ref, fn_ref, ce_ref):
        # x_ref : (1, C, block_rows, 128) logits tile (any float dtype, upcast to f32 here)
        # t_ref : (1, 1, block_rows, 128) integer label tile
        # tp_ref/sq_ref/fn_ref : (1, C, acc_rows, 128) per-(batch,chunk) vreg-resident partials
        # ce_ref : (1, acc_rows, 128) per-(batch,chunk) partial sum of -log softmax[target]
        jj = pl.program_id(2)

        @pl.when(jj == 0)
        def _init():
            tp_ref[...] = jnp.zeros_like(tp_ref)
            sq_ref[...] = jnp.zeros_like(sq_ref)
            fn_ref[...] = jnp.zeros_like(fn_ref)
            ce_ref[...] = jnp.zeros_like(ce_ref)

        t = t_ref[0, 0].astype(jnp.int32)                      # (R, 128)

        # Tail masking (only compiled in when rows_total % block_rows != 0).
        if partial_tail:
            chunk = pl.program_id(1)
            row0 = (chunk * inner_steps + jj) * block_rows
            rid = lax.broadcasted_iota(jnp.int32, (block_rows, 128), 0)
            valid = rid < (rows_total - row0)                  # (R, 128) bool
        else:
            valid = None

        def subreduce(a):
            # Collapse rows only down to one (8,128) vreg: pure vreg-wise adds, no XLU.
            if acc_rows == 8:
                return jnp.sum(a.reshape(block_rows // 8, 8, 128), axis=0)
            return jnp.sum(a, axis=0, keepdims=True)

        # Pass 1: channel max (row-wise, VPU maxes across C slices).
        x_max = x_ref[0, 0].astype(jnp.float32)
        for c in range(1, C):
            x_max = jnp.maximum(x_max, x_ref[0, c].astype(jnp.float32))

        # Pass 2: softmax denominator (exp rides the EUP slot).
        denom = jnp.exp(x_ref[0, 0].astype(jnp.float32) - x_max)
        for c in range(1, C):
            denom = denom + jnp.exp(x_ref[0, c].astype(jnp.float32) - x_max)
        inv = pl.reciprocal(denom, approx=False)               # exact: rtol 1e-5 must hold

        # Pass 3: per-channel streaming statistics (no (C,R,128) temporaries).
        x_sel = jnp.zeros((block_rows, 128), jnp.float32)      # logit at the target class
        for c in range(C):
            x_c = x_ref[0, c].astype(jnp.float32)
            sm = jnp.exp(x_c - x_max) * inv                    # softmax prob of class c
            sq = sm * sm
            y = t == c                                         # one-hot mask, no iota tensor
            if valid is not None:
                y = jnp.logical_and(y, valid)
                sq_u = jnp.where(valid, sq, 0.0)
            else:
                sq_u = sq
            one_m = 1.0 - sm
            # square=True dice stats; y in {0,1} so (sm*y)^2 = y*sm^2, ((1-sm)*y)^2 = y*(1-sm)^2.
            tp_ref[0, c] = tp_ref[0, c] + subreduce(jnp.where(y, sq, 0.0))
            sq_ref[0, c] = sq_ref[0, c] + subreduce(sq_u)      # unmasked sum(sm^2): fp = sq - tp
            fn_ref[0, c] = fn_ref[0, c] + subreduce(jnp.where(y, one_m * one_m, 0.0))
            x_sel = x_sel + jnp.where(y, x_c, 0.0)

        # Cross entropy: -log softmax[target] = logsumexp(x) - x[target]  (robust form).
        ce_tile = x_max + jnp.log(denom) - x_sel
        if valid is not None:
            ce_tile = jnp.where(valid, ce_tile, 0.0)
        ce_ref[0] = ce_ref[0] + subreduce(ce_tile)

    return kernel


def dc_and_ce_loss(net_output, target, *, smooth=1e-5, block_rows=None,
                   vmem_limit_bytes=None, logits_dtype=None, label_dtype=jnp.int32):
    """net_output: (B, C, *spatial) logits; target: (B, 1, *spatial) or (B, *spatial) labels."""
    B, C = int(net_output.shape[0]), int(net_output.shape[1])
    N = int(math.prod(net_output.shape[2:]))
    assert N % 128 == 0, "flattened spatial size must be divisible by 128"
    rows_total = N // 128

    if logits_dtype is not None:                       # optional bf16 input stream (v5e/v6e lever)
        net_output = net_output.astype(logits_dtype)
    xb = jnp.dtype(net_output.dtype).itemsize
    tb = jnp.dtype(label_dtype).itemsize

    # Generation-aware VMEM capacity (v7x: 64 MiB, v5e/v6e: 128 MiB).
    try:
        cap = int(getattr(pltpu.get_tpu_info(), "vmem_capacity_bytes", 64 * 1024 * 1024))
    except Exception:
        cap = 64 * 1024 * 1024
    if vmem_limit_bytes is None:
        vmem_limit_bytes = min(cap * 3 // 4, 96 * 1024 * 1024)

    # C- and VMEM-aware tile size.  Kernel is compute-bound -> amortization plateaus ~256-512 rows.
    gran = {4: 8, 2: 16, 1: 32}.get(xb, 8)             # sublane granularity for the logits dtype
    if block_rows is None:
        budget = min(cap // 2, 32 * 1024 * 1024)
        per_row = 128 * (2 * (C * xb + tb) + 16 * 4)   # dbl-buffered inputs + live f32 temporaries
        block_rows = max(gran, min(512, budget // per_row))
    block_rows = max(1, min(int(block_rows), rows_total))
    if block_rows < rows_total:
        block_rows = min(rows_total, max(gran, (block_rows // gran) * gran))

    total_steps = -(-rows_total // block_rows)                     # cdiv
    n_chunks = 2 if (total_steps % 2 == 0 and total_steps >= 2) else 1   # feed both v7x TCs
    inner_steps = total_steps // n_chunks
    partial_tail = (total_steps * block_rows) != rows_total
    acc_rows = 8 if block_rows % 8 == 0 else 1

    x = net_output.reshape(B, C, rows_total, 128)
    t = target.reshape(B, 1, rows_total, 128).astype(label_dtype)

    grid = (B, n_chunks, inner_steps)
    kernel = _make_kernel(C, block_rows, rows_total, inner_steps, acc_rows, partial_tail)

    stat_spec = pl.BlockSpec((1, C, acc_rows, 128),
                             lambda b, ch, jj: (b * n_chunks + ch, 0, 0, 0))
    ce_spec = pl.BlockSpec((1, acc_rows, 128),
                           lambda b, ch, jj: (b * n_chunks + ch, 0, 0))

    cost = pl.CostEstimate(
        flops=int(16 * C) * B * N,
        transcendentals=int(2 * C + 2) * B * N,
        bytes_accessed=int(x.size * xb + t.size * tb
                           + (3 * C + 1) * B * n_chunks * acc_rows * 128 * 4),
    )

    tp, sq, fn, ce = pl.pallas_call(
        kernel,
        out_shape=(
            jax.ShapeDtypeStruct((B * n_chunks, C, acc_rows, 128), jnp.float32),  # tp^2 partials
            jax.ShapeDtypeStruct((B * n_chunks, C, acc_rows, 128), jnp.float32),  # sum(sm^2)
            jax.ShapeDtypeStruct((B * n_chunks, C, acc_rows, 128), jnp.float32),  # fn^2 partials
            jax.ShapeDtypeStruct((B * n_chunks, acc_rows, 128), jnp.float32),     # CE partials
        ),
        grid_spec=pltpu.PrefetchScalarGridSpec(
            num_scalar_prefetch=0,
            grid=grid,
            in_specs=[
                pl.BlockSpec((1, C, block_rows, 128),
                             lambda b, ch, jj: (b, 0, ch * inner_steps + jj, 0)),
                pl.BlockSpec((1, 1, block_rows, 128),
                             lambda b, ch, jj: (b, 0, ch * inner_steps + jj, 0)),
            ],
            out_specs=[stat_spec, stat_spec, stat_spec, ce_spec],
        ),
        compiler_params=pltpu.CompilerParams(
            dimension_semantics=("parallel", "parallel", "arbitrary"),
            vmem_limit_bytes=int(vmem_limit_bytes),
        ),
        cost_estimate=cost,
    )(x, t)

    # Tiny JAX epilogue: one cross-lane/batch reduce + the dice / CE algebra.
    tp_c = jnp.sum(tp, axis=(0, 2, 3))                 # (C,)
    sq_c = jnp.sum(sq, axis=(0, 2, 3))
    fn_c = jnp.sum(fn, axis=(0, 2, 3))
    fp_c = sq_c - tp_c                                 # fp = sum(sm^2) - tp  (review item 1)
    dc = (2.0 * tp_c + smooth) / (2.0 * tp_c + fp_c + fn_c + smooth)
    dc_loss = 1.0 - jnp.mean(dc[1:])                   # do_bg=False, batch_dice=True
    ce_loss = jnp.sum(ce) / float(B * N)               # CrossEntropyLoss mean reduction
    return ce_loss + dc_loss


def _dc_and_ce_ref(net_output, target, smooth=1e-5):
    """Pure-JAX reference mirroring the PyTorch DC_and_CE_loss forward."""
    x = net_output.astype(jnp.float32)
    C = x.shape[1]
    sm = jax.nn.softmax(x, axis=1)
    t = target.reshape(x.shape[0], *x.shape[2:]).astype(jnp.int32)
    onehot = jnp.moveaxis(jax.nn.one_hot(t, C, dtype=jnp.float32), -1, 1)

    tp = (sm * onehot) ** 2
    fp = (sm * (1.0 - onehot)) ** 2
    fn = ((1.0 - sm) * onehot) ** 2
    axes = (0,) + tuple(range(2, x.ndim))
    tp = jnp.sum(tp, axis=axes)
    fp = jnp.sum(fp, axis=axes)
    fn = jnp.sum(fn, axis=axes)
    dc = (2.0 * tp + smooth) / (2.0 * tp + fp + fn + smooth)
    dc_loss = 1.0 - jnp.mean(dc[1:])

    logits = jnp.moveaxis(x, 1, -1).reshape(-1, C)
    labels = t.reshape(-1)
    logp = jax.nn.log_softmax(logits, axis=-1)
    ce_loss = -jnp.mean(jnp.take_along_axis(logp, labels[:, None], axis=-1))
    return ce_loss + dc_loss


if __name__ == "__main__":
    key = jax.random.PRNGKey(0)
    k1, k2, k3, k4 = jax.random.split(key, 4)

    # Case 1: divisible rows -> exercises the chunk-parallel axis AND accumulation over the
    # inner "arbitrary" axis (rows_total=32, block_rows=8 -> grid (2, 2, 2)).
    B, C, X, Y, Z = 2, 4, 8, 16, 32          # N = 4096 -> 32 lane-rows of 128
    net_output = jax.random.normal(k1, (B, C, X, Y, Z), dtype=jnp.float32)
    target = (jax.random.uniform(k2, (B, 1, X, Y, Z)) * C).astype(jnp.int32)
    loss1 = jax.block_until_ready(dc_and_ce_loss(net_output, target, block_rows=8))
    ref1 = jax.block_until_ready(_dc_and_ce_ref(net_output, target))
    assert jnp.allclose(loss1, ref1, rtol=1e-5, atol=1e-6), (loss1, ref1)

    # Case 2: rows_total (24) not divisible by block_rows (16) -> cdiv grid + tail masking.
    B2, C2, X2, Y2 = 1, 4, 24, 128           # N = 3072 -> 24 lane-rows of 128
    net_output2 = jax.random.normal(k3, (B2, C2, X2, Y2), dtype=jnp.float32)
    target2 = (jax.random.uniform(k4, (B2, 1, X2, Y2)) * C2).astype(jnp.int32)
    loss2 = jax.block_until_ready(dc_and_ce_loss(net_output2, target2, block_rows=16))
    ref2 = jax.block_until_ready(_dc_and_ce_ref(net_output2, target2))
    assert jnp.allclose(loss2, ref2, rtol=1e-5, atol=1e-6), (loss2, ref2)

    print("KERNEL_OK")
</pallas_src>

<mosaic_0001>
module attributes {stable_mosaic.version = 11 : i64} {
  func.func @kernel(%arg0: i32, %arg1: i32, %arg2: i32, %arg3: memref<1x4x8x128xf32, #tpu.memory_space<vmem>>, %arg4: memref<1x1x8x128xi32, #tpu.memory_space<vmem>>, %arg5: memref<1x4x8x128xf32, #tpu.memory_space<vmem>>, %arg6: memref<1x4x8x128xf32, #tpu.memory_space<vmem>>, %arg7: memref<1x4x8x128xf32, #tpu.memory_space<vmem>>, %arg8: memref<1x8x128xf32, #tpu.memory_space<vmem>>) attributes {dimension_semantics = [#tpu.dimension_semantics<parallel>, #tpu.dimension_semantics<parallel>, #tpu.dimension_semantics<arbitrary>], iteration_bounds = array<i64: 2, 2, 2>, scalar_prefetch = 0 : i64, scratch_operands = 0 : i64, tpu.core_type = #tpu.core_type<tc>, window_params = [{transform_indices = @transform_0, window_bounds = array<i64: 1, 4, 8, 128>}, {transform_indices = @transform_1, window_bounds = array<i64: 1, 1, 8, 128>}, {transform_indices = @transform_2, window_bounds = array<i64: 1, 4, 8, 128>}, {transform_indices = @transform_3, window_bounds = array<i64: 1, 4, 8, 128>}, {transform_indices = @transform_4, window_bounds = array<i64: 1, 4, 8, 128>}, {transform_indices = @transform_5, window_bounds = array<i64: 1, 8, 128>}]} {
    %c0_i32 = arith.constant 0 : i32
    %0 = arith.cmpi eq, %arg2, %c0_i32 : i32
    %1 = arith.extui %0 : i1 to i32
    %c0_i32_0 = arith.constant 0 : i32
    %2 = arith.cmpi ne, %1, %c0_i32_0 : i32
    scf.if %2 {
      %cst_181 = arith.constant 0.000000e+00 : f32
      %216 = vector.broadcast %cst_181 : f32 to vector<1x4x8x128xf32>
      %c0_182 = arith.constant 0 : index
      %c0_183 = arith.constant 0 : index
      %c0_184 = arith.constant 0 : index
      %c0_185 = arith.constant 0 : index
      %217 = vector.load %arg5[%c0_182, %c0_183, %c0_184, %c0_185] : memref<1x4x8x128xf32, #tpu.memory_space<vmem>>, vector<1x4x8x128xf32>
      tpu.vector_store %arg5[%c0_182, %c0_183, %c0_184, %c0_185], %216 {strides = array<i32>} : memref<1x4x8x128xf32, #tpu.memory_space<vmem>>, vector<1x4x8x128xf32>,
      %cst_186 = arith.constant 0.000000e+00 : f32
      %218 = vector.broadcast %cst_186 : f32 to vector<1x4x8x128xf32>
      %c0_187 = arith.constant 0 : index
      %c0_188 = arith.constant 0 : index
      %c0_189 = arith.constant 0 : index
      %c0_190 = arith.constant 0 : index
      %219 = vector.load %arg6[%c0_187, %c0_188, %c0_189, %c0_190] : memref<1x4x8x128xf32, #tpu.memory_space<vmem>>, vector<1x4x8x128xf32>
      tpu.vector_store %arg6[%c0_187, %c0_188, %c0_189, %c0_190], %218 {strides = array<i32>} : memref<1x4x8x128xf32, #tpu.memory_space<vmem>>, vector<1x4x8x128xf32>,
      %cst_191 = arith.constant 0.000000e+00 : f32
      %220 = vector.broadcast %cst_191 : f32 to vector<1x4x8x128xf32>
      %c0_192 = arith.constant 0 : index
      %c0_193 = arith.constant 0 : index
      %c0_194 = arith.constant 0 : index
      %c0_195 = arith.constant 0 : index
      %221 = vector.load %arg7[%c0_192, %c0_193, %c0_194, %c0_195] : memref<1x4x8x128xf32, #tpu.memory_space<vmem>>, vector<1x4x8x128xf32>
      tpu.vector_store %arg7[%c0_192, %c0_193, %c0_194, %c0_195], %220 {strides = array<i32>} : memref<1x4x8x128xf32, #tpu.memory_space<vmem>>, vector<1x4x8x128xf32>,
      %cst_196 = arith.constant 0.000000e+00 : f32
      %222 = vector.broadcast %cst_196 : f32 to vector<1x8x128xf32>
      %c0_197 = arith.constant 0 : index
      %c0_198 = arith.constant 0 : index
      %c0_199 = arith.constant 0 : index
      %223 = vector.load %arg8[%c0_197, %c0_198, %c0_199] : memref<1x8x128xf32, #tpu.memory_space<vmem>>, vector<1x8x128xf32>
      tpu.vector_store %arg8[%c0_197, %c0_198, %c0_199], %222 {strides = array<i32>} : memref<1x8x128xf32, #tpu.memory_space<vmem>>, vector<1x8x128xf32>,
    } else {
    }
    %c0 = arith.constant 0 : index
    %c0_1 = arith.constant 0 : index
    %c0_2 = arith.constant 0 : index
    %c0_3 = arith.constant 0 : index
    %3 = vector.load %arg4[%c0, %c0_1, %c0_2, %c0_3] : memref<1x1x8x128xi32, #tpu.memory_space<vmem>>, vector<1x1x8x128xi32>
    %4 = vector.shape_cast %3 : vector<1x1x8x128xi32> to vector<8x128xi32>
    %c0_4 = arith.constant 0 : index
    %c0_5 = arith.constant 0 : index
    %c0_6 = arith.constant 0 : index
    %c0_7 = arith.constant 0 : index
    %5 = vector.load %arg3[%c0_4, %c0_5, %c0_6, %c0_7] : memref<1x4x8x128xf32, #tpu.memory_space<vmem>>, vector<1x1x8x128xf32>
    %6 = vector.shape_cast %5 : vector<1x1x8x128xf32> to vector<8x128xf32>
    %c0_8 = arith.constant 0 : index
    %c1 = arith.constant 1 : index
    %c0_9 = arith.constant 0 : index
    %c0_10 = arith.constant 0 : index
    %7 = vector.load %arg3[%c0_8, %c1, %c0_9, %c0_10] : memref<1x4x8x128xf32, #tpu.memory_space<vmem>>, vector<1x1x8x128xf32>
    %8 = vector.shape_cast %7 : vector<1x1x8x128xf32> to vector<8x128xf32>
    %9 = arith.maximumf %6, %8 : vector<8x128xf32>
    %c0_11 = arith.constant 0 : index
    %c2 = arith.constant 2 : index
    %c0_12 = arith.constant 0 : index
    %c0_13 = arith.constant 0 : index
    %10 = vector.load %arg3[%c0_11, %c2, %c0_12, %c0_13] : memref<1x4x8x128xf32, #tpu.memory_space<vmem>>, vector<1x1x8x128xf32>
    %11 = vector.shape_cast %10 : vector<1x1x8x128xf32> to vector<8x128xf32>
    %12 = arith.maximumf %9, %11 : vector<8x128xf32>
    %c0_14 = arith.constant 0 : index
    %c3 = arith.constant 3 : index
    %c0_15 = arith.constant 0 : index
    %c0_16 = arith.constant 0 : index
    %13 = vector.load %arg3[%c0_14, %c3, %c0_15, %c0_16] : memref<1x4x8x128xf32, #tpu.memory_space<vmem>>, vector<1x1x8x128xf32>
    %14 = vector.shape_cast %13 : vector<1x1x8x128xf32> to vector<8x128xf32>
    %15 = arith.maximumf %12, %14 : vector<8x128xf32>
    %c0_17 = arith.constant 0 : index
    %c0_18 = arith.constant 0 : index
    %c0_19 = arith.constant 0 : index
    %c0_20 = arith.constant 0 : index
    %16 = vector.load %arg3[%c0_17, %c0_18, %c0_19, %c0_20] : memref<1x4x8x128xf32, #tpu.memory_space<vmem>>, vector<1x1x8x128xf32>
    %17 = vector.shape_cast %16 : vector<1x1x8x128xf32> to vector<8x128xf32>
    %18 = arith.subf %17, %15 : vector<8x128xf32>
    %19 = math.exp %18 : vector<8x128xf32>
    %c0_21 = arith.constant 0 : index
    %c1_22 = arith.constant 1 : index
    %c0_23 = arith.constant 0 : index
    %c0_24 = arith.constant 0 : index
    %20 = vector.load %arg3[%c0_21, %c1_22, %c0_23, %c0_24] : memref<1x4x8x128xf32, #tpu.memory_space<vmem>>, vector<1x1x8x128xf32>
    %21 = vector.shape_cast %20 : vector<1x1x8x128xf32> to vector<8x128xf32>
    %22 = arith.subf %21, %15 : vector<8x128xf32>
    %23 = math.exp %22 : vector<8x128xf32>
    %24 = arith.addf %19, %23 : vector<8x128xf32>
    %c0_25 = arith.constant 0 : index
    %c2_26 = arith.constant 2 : index
    %c0_27 = arith.constant 0 : index
    %c0_28 = arith.constant 0 : index
    %25 = vector.load %arg3[%c0_25, %c2_26, %c0_27, %c0_28] : memref<1x4x8x128xf32, #tpu.memory_space<vmem>>, vector<1x1x8x128xf32>
    %26 = vector.shape_cast %25 : vector<1x1x8x128xf32> to vector<8x128xf32>
    %27 = arith.subf %26, %15 : vector<8x128xf32>
    %28 = math.exp %27 : vector<8x128xf32>
    %29 = arith.addf %24, %28 : vector<8x128xf32>
    %c0_29 = arith.constant 0 : index
    %c3_30 = arith.constant 3 : index
    %c0_31 = arith.constant 0 : index
    %c0_32 = arith.constant 0 : index
    %30 = vector.load %arg3[%c0_29, %c3_30, %c0_31, %c0_32] : memref<1x4x8x128xf32, #tpu.memory_space<vmem>>, vector<1x1x8x128xf32>
    %31 = vector.shape_cast %30 : vector<1x1x8x128xf32> to vector<8x128xf32>
    %32 = arith.subf %31, %15 : vector<8x128xf32>
    %33 = math.exp %32 : vector<8x128xf32>
    %34 = arith.addf %29, %33 : vector<8x128xf32>
    %35 = tpu.reciprocal %34 : vector<8x128xf32> -> vector<8x128xf32>
    %cst = arith.constant 0.000000e+00 : f32
    %36 = vector.broadcast %cst : f32 to vector<8x128xf32>
    %c0_33 = arith.constant 0 : index
    %c0_34 = arith.constant 0 : index
    %c0_35 = arith.constant 0 : index
    %c0_36 = arith.constant 0 : index
    %37 = vector.load %arg3[%c0_33, %c0_34, %c0_35, %c0_36] : memref<1x4x8x128xf32, #tpu.memory_space<vmem>>, vector<1x1x8x128xf32>
    %38 = vector.shape_cast %37 : vector<1x1x8x128xf32> to vector<8x128xf32>
    %39 = arith.subf %38, %15 : vector<8x128xf32>
    %40 = math.exp %39 : vector<8x128xf32>
    %41 = arith.mulf %40, %35 : vector<8x128xf32>
    %42 = arith.mulf %41, %41 : vector<8x128xf32>
    %c0_i32_37 = arith.constant 0 : i32
    %43 = vector.broadcast %c0_i32_37 : i32 to vector<8x128xi32>
    %44 = arith.cmpi eq, %4, %43 : vector<8x128xi32>
    %cst_38 = arith.constant 1.000000e+00 : f32
    %45 = vector.broadcast %cst_38 : f32 to vector<8x128xf32>
    %46 = arith.subf %45, %41 : vector<8x128xf32>
    %c0_39 = arith.constant 0 : index
    %c0_40 = arith.constant 0 : index
    %c0_41 = arith.constant 0 : index
    %c0_42 = arith.constant 0 : index
    %47 = vector.load %arg5[%c0_39, %c0_40, %c0_41, %c0_42] : memref<1x4x8x128xf32, #tpu.memory_space<vmem>>, vector<1x1x8x128xf32>
    %48 = vector.shape_cast %47 : vector<1x1x8x128xf32> to vector<8x128xf32>
    %cst_43 = arith.constant 0.000000e+00 : f32
    %49 = vector.broadcast %cst_43 : f32 to vector<8x128xf32>
    %50 = arith.select %44, %42, %49 : vector<8x128xi1>, vector<8x128xf32>
    %51 = vector.shape_cast %50 : vector<8x128xf32> to vector<1x8x128xf32>
    %cst_44 = arith.constant dense<0.000000e+00> : vector<8x128xf32>
    %52 = vector.multi_reduction <add>, %51, %cst_44 [0] : vector<1x8x128xf32> to vector<8x128xf32>
    %53 = arith.addf %48, %52 : vector<8x128xf32>
    %c0_45 = arith.constant 0 : index
    %c0_46 = arith.constant 0 : index
    %c0_47 = arith.constant 0 : index
    %c0_48 = arith.constant 0 : index
    %54 = vector.load %arg5[%c0_45, %c0_46, %c0_47, %c0_48] : memref<1x4x8x128xf32, #tpu.memory_space<vmem>>, vector<1x1x8x128xf32>
    %55 = vector.shape_cast %54 : vector<1x1x8x128xf32> to vector<8x128xf32>
    %56 = vector.shape_cast %53 : vector<8x128xf32> to vector<1x1x8x128xf32>
    tpu.vector_store %arg5[%c0_45, %c0_46, %c0_47, %c0_48], %56 {strides = array<i32>} : memref<1x4x8x128xf32, #tpu.memory_space<vmem>>, vector<1x1x8x128xf32>,
    %c0_49 = arith.constant 0 : index
    %c0_50 = arith.constant 0 : index
    %c0_51 = arith.constant 0 : index
    %c0_52 = arith.constant 0 : index
    %57 = vector.load %arg6[%c0_49, %c0_50, %c0_51, %c0_52] : memref<1x4x8x128xf32, #tpu.memory_space<vmem>>, vector<1x1x8x128xf32>
    %58 = vector.shape_cast %57 : vector<1x1x8x128xf32> to vector<8x128xf32>
    %59 = vector.shape_cast %42 : vector<8x128xf32> to vector<1x8x128xf32>
    %cst_53 = arith.constant dense<0.000000e+00> : vector<8x128xf32>
    %60 = vector.multi_reduction <add>, %59, %cst_53 [0] : vector<1x8x128xf32> to vector<8x128xf32>
    %61 = arith.addf %58, %60 : vector<8x128xf32>
    %c0_54 = arith.constant 0 : index
    %c0_55 = arith.constant 0 : index
    %c0_56 = arith.constant 0 : index
    %c0_57 = arith.constant 0 : index
    %62 = vector.load %arg6[%c0_54, %c0_55, %c0_56, %c0_57] : memref<1x4x8x128xf32, #tpu.memory_space<vmem>>, vector<1x1x8x128xf32>
    %63 = vector.shape_cast %62 : vector<1x1x8x128xf32> to vector<8x128xf32>
    %64 = vector.shape_cast %61 : vector<8x128xf32> to vector<1x1x8x128xf32>
    tpu.vector_store %arg6[%c0_54, %c0_55, %c0_56, %c0_57], %64 {strides = array<i32>} : memref<1x4x8x128xf32, #tpu.memory_space<vmem>>, vector<1x1x8x128xf32>,
    %c0_58 = arith.constant 0 : index
    %c0_59 = arith.constant 0 : index
    %c0_60 = arith.constant 0 : index
    %c0_61 = arith.constant 0 : index
    %65 = vector.load %arg7[%c0_58, %c0_59, %c0_60, %c0_61] : memref<1x4x8x128xf32, #tpu.memory_space<vmem>>, vector<1x1x8x128xf32>
    %66 = vector.shape_cast %65 : vector<1x1x8x128xf32> to vector<8x128xf32>
    %67 = arith.mulf %46, %46 : vector<8x128xf32>
    %cst_62 = arith.constant 0.000000e+00 : f32
    %68 = vector.broadcast %cst_62 : f32 to vector<8x128xf32>
    %69 = arith.select %44, %67, %68 : vector<8x128xi1>, vector<8x128xf32>
    %70 = vector.shape_cast %69 : vector<8x128xf32> to vector<1x8x128xf32>
    %cst_63 = arith.constant dense<0.000000e+00> : vector<8x128xf32>
    %71 = vector.multi_reduction <add>, %70, %cst_63 [0] : vector<1x8x128xf32> to vector<8x128xf32>
    %72 = arith.addf %66, %71 : vector<8x128xf32>
    %c0_64 = arith.constant 0 : index
    %c0_65 = arith.constant 0 : index
    %c0_66 = arith.constant 0 : index
    %c0_67 = arith.constant 0 : index
    %73 = vector.load %arg7[%c0_64, %c0_65, %c0_66, %c0_67] : memref<1x4x8x128xf32, #tpu.memory_space<vmem>>, vector<1x1x8x128xf32>
    %74 = vector.shape_cast %73 : vector<1x1x8x128xf32> to vector<8x128xf32>
    %75 = vector.shape_cast %72 : vector<8x128xf32> to vector<1x1x8x128xf32>
    tpu.vector_store %arg7[%c0_64, %c0_65, %c0_66, %c0_67], %75 {strides = array<i32>} : memref<1x4x8x128xf32, #tpu.memory_space<vmem>>, vector<1x1x8x128xf32>,
    %cst_68 = arith.constant 0.000000e+00 : f32
    %76 = vector.broadcast %cst_68 : f32 to vector<8x128xf32>
    %77 = arith.select %44, %38, %76 : vector<8x128xi1>, vector<8x128xf32>
    %78 = arith.addf %36, %77 : vector<8x128xf32>
    %c0_69 = arith.constant 0 : index
    %c1_70 = arith.constant 1 : index
    %c0_71 = arith.constant 0 : index
    %c0_72 = arith.constant 0 : index
    %79 = vector.load %arg3[%c0_69, %c1_70, %c0_71, %c0_72] : memref<1x4x8x128xf32, #tpu.memory_space<vmem>>, vector<1x1x8x128xf32>
    %80 = vector.shape_cast %79 : vector<1x1x8x128xf32> to vector<8x128xf32>
    %81 = arith.subf %80, %15 : vector<8x128xf32>
    %82 = math.exp %81 : vector<8x128xf32>
    %83 = arith.mulf %82, %35 : vector<8x128xf32>
    %84 = arith.mulf %83, %83 : vector<8x128xf32>
    %c1_i32 = arith.constant 1 : i32
    %85 = vector.broadcast %c1_i32 : i32 to vector<8x128xi32>
    %86 = arith.cmpi eq, %4, %85 : vector<8x128xi32>
    %cst_73 = arith.constant 1.000000e+00 : f32
    %87 = vector.broadcast %cst_73 : f32 to vector<8x128xf32>
    %88 = arith.subf %87, %83 : vector<8x128xf32>
    %c0_74 = arith.constant 0 : index
    %c1_75 = arith.constant 1 : index
    %c0_76 = arith.constant 0 : index
    %c0_77 = arith.constant 0 : index
    %89 = vector.load %arg5[%c0_74, %c1_75, %c0_76, %c0_77] : memref<1x4x8x128xf32, #tpu.memory_space<vmem>>, vector<1x1x8x128xf32>
    %90 = vector.shape_cast %89 : vector<1x1x8x128xf32> to vector<8x128xf32>
    %cst_78 = arith.constant 0.000000e+00 : f32
    %91 = vector.broadcast %cst_78 : f32 to vector<8x128xf32>
    %92 = arith.select %86, %84, %91 : vector<8x128xi1>, vector<8x128xf32>
    %93 = vector.shape_cast %92 : vector<8x128xf32> to vector<1x8x128xf32>
    %cst_79 = arith.constant dense<0.000000e+00> : vector<8x128xf32>
    %94 = vector.multi_reduction <add>, %93, %cst_79 [0] : vector<1x8x128xf32> to vector<8x128xf32>
    %95 = arith.addf %90, %94 : vector<8x128xf32>
    %c0_80 = arith.constant 0 : index
    %c1_81 = arith.constant 1 : index
    %c0_82 = arith.constant 0 : index
    %c0_83 = arith.constant 0 : index
    %96 = vector.load %arg5[%c0_80, %c1_81, %c0_82, %c0_83] : memref<1x4x8x128xf32, #tpu.memory_space<vmem>>, vector<1x1x8x128xf32>
    %97 = vector.shape_cast %96 : vector<1x1x8x128xf32> to vector<8x128xf32>
    %98 = vector.shape_cast %95 : vector<8x128xf32> to vector<1x1x8x128xf32>
    tpu.vector_store %arg5[%c0_80, %c1_81, %c0_82, %c0_83], %98 {strides = array<i32>} : memref<1x4x8x128xf32, #tpu.memory_space<vmem>>, vector<1x1x8x128xf32>,
    %c0_84 = arith.constant 0 : index
    %c1_85 = arith.constant 1 : index
    %c0_86 = arith.constant 0 : index
    %c0_87 = arith.constant 0 : index
    %99 = vector.load %arg6[%c0_84, %c1_85, %c0_86, %c0_87] : memref<1x4x8x128xf32, #tpu.memory_space<vmem>>, vector<1x1x8x128xf32>
    %100 = vector.shape_cast %99 : vector<1x1x8x128xf32> to vector<8x128xf32>
    %101 = vector.shape_cast %84 : vector<8x128xf32> to vector<1x8x128xf32>
    %cst_88 = arith.constant dense<0.000000e+00> : vector<8x128xf32>
    %102 = vector.multi_reduction <add>, %101, %cst_88 [0] : vector<1x8x128xf32> to vector<8x128xf32>
    %103 = arith.addf %100, %102 : vector<8x128xf32>
    %c0_89 = arith.constant 0 : index
    %c1_90 = arith.constant 1 : index
    %c0_91 = arith.constant 0 : index
    %c0_92 = arith.constant 0 : index
    %104 = vector.load %arg6[%c0_89, %c1_90, %c0_91, %c0_92] : memref<1x4x8x128xf32, #tpu.memory_space<vmem>>, vector<1x1x8x128xf32>
    %105 = vector.shape_cast %104 : vector<1x1x8x128xf32> to vector<8x128xf32>
    %106 = vector.shape_cast %103 : vector<8x128xf32> to vector<1x1x8x128xf32>
    tpu.vector_store %arg6[%c0_89, %c1_90, %c0_91, %c0_92], %106 {strides = array<i32>} : memref<1x4x8x128xf32, #tpu.memory_space<vmem>>, vector<1x1x8x128xf32>,
    %c0_93 = arith.constant 0 : index
    %c1_94 = arith.constant 1 : index
    %c0_95 = arith.constant 0 : index
    %c0_96 = arith.constant 0 : index
    %107 = vector.load %arg7[%c0_93, %c1_94, %c0_95, %c0_96] : memref<1x4x8x128xf32, #tpu.memory_space<vmem>>, vector<1x1x8x128xf32>
    %108 = vector.shape_cast %107 : vector<1x1x8x128xf32> to vector<8x128xf32>
    %109 = arith.mulf %88, %88 : vector<8x128xf32>
    %cst_97 = arith.constant 0.000000e+00 : f32
    %110 = vector.broadcast %cst_97 : f32 to vector<8x128xf32>
    %111 = arith.select %86, %109, %110 : vector<8x128xi1>, vector<8x128xf32>
    %112 = vector.shape_cast %111 : vector<8x128xf32> to vector<1x8x128xf32>
    %cst_98 = arith.constant dense<0.000000e+00> : vector<8x128xf32>
    %113 = vector.multi_reduction <add>, %112, %cst_98 [0] : vector<1x8x128xf32> to vector<8x128xf32>
    %114 = arith.addf %108, %113 : vector<8x128xf32>
    %c0_99 = arith.constant 0 : index
    %c1_100 = arith.constant 1 : index
    %c0_101 = arith.constant 0 : index
    %c0_102 = arith.constant 0 : index
    %115 = vector.load %arg7[%c0_99, %c1_100, %c0_101, %c0_102] : memref<1x4x8x128xf32, #tpu.memory_space<vmem>>, vector<1x1x8x128xf32>
    %116 = vector.shape_cast %115 : vector<1x1x8x128xf32> to vector<8x128xf32>
    %117 = vector.shape_cast %114 : vector<8x128xf32> to vector<1x1x8x128xf32>
    tpu.vector_store %arg7[%c0_99, %c1_100, %c0_101, %c0_102], %117 {strides = array<i32>} : memref<1x4x8x128xf32, #tpu.memory_space<vmem>>, vector<1x1x8x128xf32>,
    %cst_103 = arith.constant 0.000000e+00 : f32
    %118 = vector.broadcast %cst_103 : f32 to vector<8x128xf32>
    %119 = arith.select %86, %80, %118 : vector<8x128xi1>, vector<8x128xf32>
    %120 = arith.addf %78, %119 : vector<8x128xf32>
    %c0_104 = arith.constant 0 : index
    %c2_105 = arith.constant 2 : index
    %c0_106 = arith.constant 0 : index
    %c0_107 = arith.constant 0 : index
    %121 = vector.load %arg3[%c0_104, %c2_105, %c0_106, %c0_107] : memref<1x4x8x128xf32, #tpu.memory_space<vmem>>, vector<1x1x8x128xf32>
    %122 = vector.shape_cast %121 : vector<1x1x8x128xf32> to vector<8x128xf32>
    %123 = arith.subf %122, %15 : vector<8x128xf32>
    %124 = math.exp %123 : vector<8x128xf32>
    %125 = arith.mulf %124, %35 : vector<8x128xf32>
    %126 = arith.mulf %125, %125 : vector<8x128xf32>
    %c2_i32 = arith.constant 2 : i32
    %127 = vector.broadcast %c2_i32 : i32 to vector<8x128xi32>
    %128 = arith.cmpi eq, %4, %127 : vector<8x128xi32>
    %cst_108 = arith.constant 1.000000e+00 : f32
    %129 = vector.broadcast %cst_108 : f32 to vector<8x128xf32>
    %130 = arith.subf %129, %125 : vector<8x128xf32>
    %c0_109 = arith.constant 0 : index
    %c2_110 = arith.constant 2 : index
    %c0_111 = arith.constant 0 : index
    %c0_112 = arith.constant 0 : index
    %131 = vector.load %arg5[%c0_109, %c2_110, %c0_111, %c0_112] : memref<1x4x8x128xf32, #tpu.memory_space<vmem>>, vector<1x1x8x128xf32>
    %132 = vector.shape_cast %131 : vector<1x1x8x128xf32> to vector<8x128xf32>
    %cst_113 = arith.constant 0.000000e+00 : f32
    %133 = vector.broadcast %cst_113 : f32 to vector<8x128xf32>
    %134 = arith.select %128, %126, %133 : vector<8x128xi1>, vector<8x128xf32>
    %135 = vector.shape_cast %134 : vector<8x128xf32> to vector<1x8x128xf32>
    %cst_114 = arith.constant dense<0.000000e+00> : vector<8x128xf32>
    %136 = vector.multi_reduction <add>, %135, %cst_114 [0] : vector<1x8x128xf32> to vector<8x128xf32>
    %137 = arith.addf %132, %136 : vector<8x128xf32>
    %c0_115 = arith.constant 0 : index
    %c2_116 = arith.constant 2 : index
    %c0_117 = arith.constant 0 : index
    %c0_118 = arith.constant 0 : index
    %138 = vector.load %arg5[%c0_115, %c2_116, %c0_117, %c0_118] : memref<1x4x8x128xf32, #tpu.memory_space<vmem>>, vector<1x1x8x128xf32>
    %139 = vector.shape_cast %138 : vector<1x1x8x128xf32> to vector<8x128xf32>
    %140 = vector.shape_cast %137 : vector<8x128xf32> to vector<1x1x8x128xf32>
    tpu.vector_store %arg5[%c0_115, %c2_116, %c0_117, %c0_118], %140 {strides = array<i32>} : memref<1x4x8x128xf32, #tpu.memory_space<vmem>>, vector<1x1x8x128xf32>,
    %c0_119 = arith.constant 0 : index
    %c2_120 = arith.constant 2 : index
    %c0_121 = arith.constant 0 : index
    %c0_122 = arith.constant 0 : index
    %141 = vector.load %arg6[%c0_119, %c2_120, %c0_121, %c0_122] : memref<1x4x8x128xf32, #tpu.memory_space<vmem>>, vector<1x1x8x128xf32>
    %142 = vector.shape_cast %141 : vector<1x1x8x128xf32> to vector<8x128xf32>
    %143 = vector.shape_cast %126 : vector<8x128xf32> to vector<1x8x128xf32>
    %cst_123 = arith.constant dense<0.000000e+00> : vector<8x128xf32>
    %144 = vector.multi_reduction <add>, %143, %cst_123 [0] : vector<1x8x128xf32> to vector<8x128xf32>
    %145 = arith.addf %142, %144 : vector<8x128xf32>
    %c0_124 = arith.constant 0 : index
    %c2_125 = arith.constant 2 : index
    %c0_126 = arith.constant 0 : index
    %c0_127 = arith.constant 0 : index
    %146 = vector.load %arg6[%c0_124, %c2_125, %c0_126, %c0_127] : memref<1x4x8x128xf32, #tpu.memory_space<vmem>>, vector<1x1x8x128xf32>
    %147 = vector.shape_cast %146 : vector<1x1x8x128xf32> to vector<8x128xf32>
    %148 = vector.shape_cast %145 : vector<8x128xf32> to vector<1x1x8x128xf32>
    tpu.vector_store %arg6[%c0_124, %c2_125, %c0_126, %c0_127], %148 {strides = array<i32>} : memref<1x4x8x128xf32, #tpu.memory_space<vmem>>, vector<1x1x8x128xf32>,
    %c0_128 = arith.constant 0 : index
    %c2_129 = arith.constant 2 : index
    %c0_130 = arith.constant 0 : index
    %c0_131 = arith.constant 0 : index
    %149 = vector.load %arg7[%c0_128, %c2_129, %c0_130, %c0_131] : memref<1x4x8x128xf32, #tpu.memory_space<vmem>>, vector<1x1x8x128xf32>
    %150 = vector.shape_cast %149 : vector<1x1x8x128xf32> to vector<8x128xf32>
    %151 = arith.mulf %130, %130 : vector<8x128xf32>
    %cst_132 = arith.constant 0.000000e+00 : f32
    %152 = vector.broadcast %cst_132 : f32 to vector<8x128xf32>
    %153 = arith.select %128, %151, %152 : vector<8x128xi1>, vector<8x128xf32>
    %154 = vector.shape_cast %153 : vector<8x128xf32> to vector<1x8x128xf32>
    %cst_133 = arith.constant dense<0.000000e+00> : vector<8x128xf32>
    %155 = vector.multi_reduction <add>, %154, %cst_133 [0] : vector<1x8x128xf32> to vector<8x128xf32>
    %156 = arith.addf %150, %155 : vector<8x128xf32>
    %c0_134 = arith.constant 0 : index
    %c2_135 = arith.constant 2 : index
    %c0_136 = arith.constant 0 : index
    %c0_137 = arith.constant 0 : index
    %157 = vector.load %arg7[%c0_134, %c2_135, %c0_136, %c0_137] : memref<1x4x8x128xf32, #tpu.memory_space<vmem>>, vector<1x1x8x128xf32>
    %158 = vector.shape_cast %157 : vector<1x1x8x128xf32> to vector<8x128xf32>
    %159 = vector.shape_cast %156 : vector<8x128xf32> to vector<1x1x8x128xf32>
    tpu.vector_store %arg7[%c0_134, %c2_135, %c0_136, %c0_137], %159 {strides = array<i32>} : memref<1x4x8x128xf32, #tpu.memory_space<vmem>>, vector<1x1x8x128xf32>,
    %cst_138 = arith.constant 0.000000e+00 : f32
    %160 = vector.broadcast %cst_138 : f32 to vector<8x128xf32>
    %161 = arith.select %128, %122, %160 : vector<8x128xi1>, vector<8x128xf32>
    %162 = arith.addf %120, %161 : vector<8x128xf32>
    %c0_139 = arith.constant 0 : index
    %c3_140 = arith.constant 3 : index
    %c0_141 = arith.constant 0 : index
    %c0_142 = arith.constant 0 : index
    %163 = vector.load %arg3[%c0_139, %c3_140, %c0_141, %c0_142] : memref<1x4x8x128xf32, #tpu.memory_space<vmem>>, vector<1x1x8x128xf32>
    %164 = vector.shape_cast %163 : vector<1x1x8x128xf32> to vector<8x128xf32>
    %165 = arith.subf %164, %15 : vector<8x128xf32>
    %166 = math.exp %165 : vector<8x128xf32>
    %167 = arith.mulf %166, %35 : vector<8x128xf32>
    %168 = arith.mulf %167, %167 : vector<8x128xf32>
    %c3_i32 = arith.constant 3 : i32
    %169 = vector.broadcast %c3_i32 : i32 to vector<8x128xi32>
    %170 = arith.cmpi eq, %4, %169 : vector<8x128xi32>
    %cst_143 = arith.constant 1.000000e+00 : f32
    %171 = vector.broadcast %cst_143 : f32 to vector<8x128xf32>
    %172 = arith.subf %171, %167 : vector<8x128xf32>
    %c0_144 = arith.constant 0 : index
    %c3_145 = arith.constant 3 : index
    %c0_146 = arith.constant 0 : index
    %c0_147 = arith.constant 0 : index
    %173 = vector.load %arg5[%c0_144, %c3_145, %c0_146, %c0_147] : memref<1x4x8x128xf32, #tpu.memory_space<vmem>>, vector<1x1x8x128xf32>
    %174 = vector.shape_cast %173 : vector<1x1x8x128xf32> to vector<8x128xf32>
    %cst_148 = arith.constant 0.000000e+00 : f32
    %175 = vector.broadcast %cst_148 : f32 to vector<8x128xf32>
    %176 = arith.select %170, %168, %175 : vector<8x128xi1>, vector<8x128xf32>
    %177 = vector.shape_cast %176 : vector<8x128xf32> to vector<1x8x128xf32>
    %cst_149 = arith.constant dense<0.000000e+00> : vector<8x128xf32>
    %178 = vector.multi_reduction <add>, %177, %cst_149 [0] : vector<1x8x128xf32> to vector<8x128xf32>
    %179 = arith.addf %174, %178 : vector<8x128xf32>
    %c0_150 = arith.constant 0 : index
    %c3_151 = arith.constant 3 : index
    %c0_152 = arith.constant 0 : index
    %c0_153 = arith.constant 0 : index
    %180 = vector.load %arg5[%c0_150, %c3_151, %c0_152, %c0_153] : memref<1x4x8x128xf32, #tpu.memory_space<vmem>>, vector<1x1x8x128xf32>
    %181 = vector.shape_cast %180 : vector<1x1x8x128xf32> to vector<8x128xf32>
    %182 = vector.shape_cast %179 : vector<8x128xf32> to vector<1x1x8x128xf32>
    tpu.vector_store %arg5[%c0_150, %c3_151, %c0_152, %c0_153], %182 {strides = array<i32>} : memref<1x4x8x128xf32, #tpu.memory_space<vmem>>, vector<1x1x8x128xf32>,
    %c0_154 = arith.constant 0 : index
    %c3_155 = arith.constant 3 : index
    %c0_156 = arith.constant 0 : index
    %c0_157 = arith.constant 0 : index
    %183 = vector.load %arg6[%c0_154, %c3_155, %c0_156, %c0_157] : memref<1x4x8x128xf32, #tpu.memory_space<vmem>>, vector<1x1x8x128xf32>
    %184 = vector.shape_cast %183 : vector<1x1x8x128xf32> to vector<8x128xf32>
    %185 = vector.shape_cast %168 : vector<8x128xf32> to vector<1x8x128xf32>
    %cst_158 = arith.constant dense<0.000000e+00> : vector<8x128xf32>
    %186 = vector.multi_reduction <add>, %185, %cst_158 [0] : vector<1x8x128xf32> to vector<8x128xf32>
    %187 = arith.addf %184, %186 : vector<8x128xf32>
    %c0_159 = arith.constant 0 : index
    %c3_160 = arith.constant 3 : index
    %c0_161 = arith.constant 0 : index
    %c0_162 = arith.constant 0 : index
    %188 = vector.load %arg6[%c0_159, %c3_160, %c0_161, %c0_162] : memref<1x4x8x128xf32, #tpu.memory_space<vmem>>, vector<1x1x8x128xf32>
    %189 = vector.shape_cast %188 : vector<1x1x8x128xf32> to vector<8x128xf32>
    %190 = vector.shape_cast %187 : vector<8x128xf32> to vector<1x1x8x128xf32>
    tpu.vector_store %arg6[%c0_159, %c3_160, %c0_161, %c0_162], %190 {strides = array<i32>} : memref<1x4x8x128xf32, #tpu.memory_space<vmem>>, vector<1x1x8x128xf32>,
    %c0_163 = arith.constant 0 : index
    %c3_164 = arith.constant 3 : index
    %c0_165 = arith.constant 0 : index
    %c0_166 = arith.constant 0 : index
    %191 = vector.load %arg7[%c0_163, %c3_164, %c0_165, %c0_166] : memref<1x4x8x128xf32, #tpu.memory_space<vmem>>, vector<1x1x8x128xf32>
    %192 = vector.shape_cast %191 : vector<1x1x8x128xf32> to vector<8x128xf32>
    %193 = arith.mulf %172, %172 : vector<8x128xf32>
    %cst_167 = arith.constant 0.000000e+00 : f32
    %194 = vector.broadcast %cst_167 : f32 to vector<8x128xf32>
    %195 = arith.select %170, %193, %194 : vector<8x128xi1>, vector<8x128xf32>
    %196 = vector.shape_cast %195 : vector<8x128xf32> to vector<1x8x128xf32>
    %cst_168 = arith.constant dense<0.000000e+00> : vector<8x128xf32>
    %197 = vector.multi_reduction <add>, %196, %cst_168 [0] : vector<1x8x128xf32> to vector<8x128xf32>
    %198 = arith.addf %192, %197 : vector<8x128xf32>
    %c0_169 = arith.constant 0 : index
    %c3_170 = arith.constant 3 : index
    %c0_171 = arith.constant 0 : index
    %c0_172 = arith.constant 0 : index
    %199 = vector.load %arg7[%c0_169, %c3_170, %c0_171, %c0_172] : memref<1x4x8x128xf32, #tpu.memory_space<vmem>>, vector<1x1x8x128xf32>
    %200 = vector.shape_cast %199 : vector<1x1x8x128xf32> to vector<8x128xf32>
    %201 = vector.shape_cast %198 : vector<8x128xf32> to vector<1x1x8x128xf32>
    tpu.vector_store %arg7[%c0_169, %c3_170, %c0_171, %c0_172], %201 {strides = array<i32>} : memref<1x4x8x128xf32, #tpu.memory_space<vmem>>, vector<1x1x8x128xf32>,
    %cst_173 = arith.constant 0.000000e+00 : f32
    %202 = vector.broadcast %cst_173 : f32 to vector<8x128xf32>
    %203 = arith.select %170, %164, %202 : vector<8x128xi1>, vector<8x128xf32>
    %204 = arith.addf %162, %203 : vector<8x128xf32>
    %205 = math.log %34 : vector<8x128xf32>
    %206 = arith.addf %15, %205 : vector<8x128xf32>
    %207 = arith.subf %206, %204 : vector<8x128xf32>
    %c0_174 = arith.constant 0 : index
    %c0_175 = arith.constant 0 : index
    %c0_176 = arith.constant 0 : index
    %208 = vector.load %arg8[%c0_174, %c0_175, %c0_176] : memref<1x8x128xf32, #tpu.memory_space<vmem>>, vector<1x8x128xf32>
    %209 = vector.shape_cast %208 : vector<1x8x128xf32> to vector<8x128xf32>
    %210 = vector.shape_cast %207 : vector<8x128xf32> to vector<1x8x128xf32>
    %cst_177 = arith.constant dense<0.000000e+00> : vector<8x128xf32>
    %211 = vector.multi_reduction <add>, %210, %cst_177 [0] : vector<1x8x128xf32> to vector<8x128xf32>
    %212 = arith.addf %209, %211 : vector<8x128xf32>
    %c0_178 = arith.constant 0 : index
    %c0_179 = arith.constant 0 : index
    %c0_180 = arith.constant 0 : index
    %213 = vector.load %arg8[%c0_178, %c0_179, %c0_180] : memref<1x8x128xf32, #tpu.memory_space<vmem>>, vector<1x8x128xf32>
    %214 = vector.shape_cast %213 : vector<1x8x128xf32> to vector<8x128xf32>
    %215 = vector.shape_cast %212 : vector<8x128xf32> to vector<1x8x128xf32>
    tpu.vector_store %arg8[%c0_178, %c0_179, %c0_180], %215 {strides = array<i32>} : memref<1x8x128xf32, #tpu.memory_space<vmem>>, vector<1x8x128xf32>,
    return
  }
  func.func @transform_0(%arg0: i32, %arg1: i32, %arg2: i32) -> (i32, i32, i32, i32) {
    %c2_i32 = arith.constant 2 : i32
    %0 = arith.muli %arg1, %c2_i32 : i32
    %1 = arith.addi %0, %arg2 : i32
    %c0_i32 = arith.constant 0 : i32
    %c0_i32_0 = arith.constant 0 : i32
    %c0_i32_1 = arith.constant 0 : i32
    return %arg0, %c0_i32, %1, %c0_i32_0 : i32, i32, i32, i32
  }
  func.func @transform_1(%arg0: i32, %arg1: i32, %arg2: i32) -> (i32, i32, i32, i32) {
    %c2_i32 = arith.constant 2 : i32
    %0 = arith.muli %arg1, %c2_i32 : i32
    %1 = arith.addi %0, %arg2 : i32
    %c0_i32 = arith.constant 0 : i32
    %c0_i32_0 = arith.constant 0 : i32
    %c0_i32_1 = arith.constant 0 : i32
    return %arg0, %c0_i32, %1, %c0_i32_0 : i32, i32, i32, i32
  }
  func.func @transform_2(%arg0: i32, %arg1: i32, %arg2: i32) -> (i32, i32, i32, i32) {
    %c2_i32 = arith.constant 2 : i32
    %0 = arith.muli %arg0, %c2_i32 : i32
    %1 = arith.addi %0, %arg1 : i32
    %c0_i32 = arith.constant 0 : i32
    %c0_i32_0 = arith.constant 0 : i32
    %c0_i32_1 = arith.constant 0 : i32
    %c0_i32_2 = arith.constant 0 : i32
    return %1, %c0_i32, %c0_i32_0, %c0_i32_1 : i32, i32, i32, i32
  }
  func.func @transform_3(%arg0: i32, %arg1: i32, %arg2: i32) -> (i32, i32, i32, i32) {
    %c2_i32 = arith.constant 2 : i32
    %0 = arith.muli %arg0, %c2_i32 : i32
    %1 = arith.addi %0, %arg1 : i32
    %c0_i32 = arith.constant 0 : i32
    %c0_i32_0 = arith.constant 0 : i32
    %c0_i32_1 = arith.constant 0 : i32
    %c0_i32_2 = arith.constant 0 : i32
    return %1, %c0_i32, %c0_i32_0, %c0_i32_1 : i32, i32, i32, i32
  }
  func.func @transform_4(%arg0: i32, %arg1: i32, %arg2: i32) -> (i32, i32, i32, i32) {
    %c2_i32 = arith.constant 2 : i32
    %0 = arith.muli %arg0, %c2_i32 : i32
    %1 = arith.addi %0, %arg1 : i32
    %c0_i32 = arith.constant 0 : i32
    %c0_i32_0 = arith.constant 0 : i32
    %c0_i32_1 = arith.constant 0 : i32
    %c0_i32_2 = arith.constant 0 : i32
    return %1, %c0_i32, %c0_i32_0, %c0_i32_1 : i32, i32, i32, i32
  }
  func.func @transform_5(%arg0: i32, %arg1: i32, %arg2: i32) -> (i32, i32, i32) {
    %c2_i32 = arith.constant 2 : i32
    %0 = arith.muli %arg0, %c2_i32 : i32
    %1 = arith.addi %0, %arg1 : i32
    %c0_i32 = arith.constant 0 : i32
    %c0_i32_0 = arith.constant 0 : i32
    %c0_i32_1 = arith.constant 0 : i32
    return %1, %c0_i32, %c0_i32_0 : i32, i32, i32
  }
}

</mosaic_0001>

<bundles_post_ra>
// kernel: tpu_custom_call.1
= control target key start
LH: loop header
LB: loop body
LE: loop exit
PB: predicated region body
PF: predicated region fallthrough
CT: control target
= control target key end

     0   :  { %s1948_s0 = inlined_call_operand.hbm [shape: f32[2,4,32,128], index: 0, kind: input, shape index: {}]   ;;  %s1949_s1 = inlined_call_operand.hbm [shape: s32[2,1,32,128], index: 1, kind: input, shape index: {}]   ;;  %s1950_s2 = inlined_call_operand.hbm [shape: f32[4,4,8,128], index: 2, kind: output, shape index: {0}]   ;;  %s1951_s3 = inlined_call_operand.hbm [shape: f32[4,4,8,128], index: 3, kind: output, shape index: {1}]   ;;  %s1952_s4 = inlined_call_operand.hbm [shape: f32[4,4,8,128], index: 4, kind: output, shape index: {2}]   ;;  %s1953_s5 = inlined_call_operand.hbm [shape: f32[4,8,128], index: 5, kind: output, shape index: {3}]  }
   0x1   :  { %1968 = sst [smem:[#allocation29_spill]] %s1948_s0 }
   0x2   :  { %1969 = sst [smem:[#allocation30_spill]] %s1950_s2 }
   0x3   :  { %1970 = sst [smem:[#allocation31_spill]] %s1951_s3 }
   0x4   :  { %1971 = sst [smem:[#allocation32_spill]] %s1952_s4 }
   0x5   :  { %1972 = sst [smem:[#allocation33_spill]] %s1953_s5 }
   0x6   :  { %11 = vsyncpa [#allocation3], 0 }
   0x7   :  { %13 = vsyncpa [#allocation3 + $0x1], 0 }
   0x8   :  { %14 = vsyncpa [#allocation6], 0 }
   0x9   :  { %16 = vsyncpa [#allocation6 + $0x1], 0 }
   0xa   :  { %17 = vsyncpa [#allocation4], 0 }
   0xb   :  { %19 = vsyncpa [#allocation4 + $0x1], 0 }
   0xc   :  { %20 = vsyncpa [#allocation9], 0 }
   0xd   :  { %22 = vsyncpa [#allocation9 + $0x1], 0 }
   0xe   :  { %23 = vsyncpa [#allocation12], 0 }
   0xf   :  { %25 = vsyncpa [#allocation12 + $0x1], 0  ;;  %s1405_s18 = smov 0   ;;  %s1407_s19 = smov 0  }
  0x10   :  { %s1409_s20 = smov 0   ;;  %s1411_s21 = smov 0  }
  0x11   :  { %s1413_s22 = smov 0   ;;  %s1415_s23 = smov 0  }
  0x12   :  { %s1417_s24 = smov 0   ;;  %s1419_s25 = smov 0  }
  0x13   :  { %s1421_s26 = smov 0   ;;  %s1423_s27 = smov 0  }
  0x14   :  { %s1425_s28 = smov 0   ;;  %s1427_s29 = smov 0  }
  0x15   :  { %s1429_s30 = smov 0  }
  0x16 LB: > { %1973 = sst [smem:[#allocation18_spill]] %s1321_s20  ;;  %s1471_s6 = sadd.s32 4294967295, %s1361_s30   ;;  %s1361_s30 = sphi %s1429_s30, %s31_s30   ;;  %s1357_s29 = sphi %s1427_s29, %s2020_s29   ;;  %s1353_s28 = sphi %s1425_s28, %s2012_s28   ;;  %s1349_s27 = sphi %s1423_s27, %s2011_s27   ;;  %s1345_s26 = sphi %s1421_s26, %s2019_s26   ;;  %s1341_s25 = sphi %s1419_s25, %s2018_s25   ;;  %s1337_s24 = sphi %s1417_s24, %s2009_s24   ;;  %s1333_s23 = sphi %s1415_s23, %s2008_s23   ;;  %s1329_s22 = sphi %s1413_s22, %s2017_s22   ;;  %s1325_s21 = sphi %s1411_s21, %s2016_s21   ;;  %s1321_s20 = sphi %s1409_s20, %s2006_s20   ;;  %s1317_s19 = sphi %s1407_s19, %s2015_s19   ;;  %s1313_s18 = sphi %s1405_s18, %s2014_s18  }
  0x17   : > { %1974 = sst [smem:[#allocation19_spill]] %s1333_s23  ;;  %s43_s8 = sadd.s32 1, %s1349_s27 }
  0x18   : > { %1975 = sst [smem:[#allocation20_spill]] %s1341_s25  ;;  %s46_s9 = sadd.s32 1, %s1353_s28 }
  0x19   : > { %1976 = sst [smem:[#allocation21_spill]] %s1349_s27  ;;  %p44_p0 = scmp.ge.s32.totalorder %s43_s8, 2 }
  0x1a   : > { %1977 = sst [smem:[#allocation22_spill]] %s1353_s28  ;;  %s50_s10 = sadd.s32 1, %s1357_s29 }
  0x1b   : > { %s837_s11 = sshll.u32 %s1353_s28, 1  ;;  %s63_s12 = sadd.s32 1, %s1333_s23 }
  0x1c   : > { %s2022_s8 = smov (%p44_p0, %s43_s8), 0  ;;  %s2024_s9 = smov (!%p44_p0, %s46_s9), %s1353_s28 }
  0x1d   : > { %1978 = sst [smem:[#allocation23_spill]] %s2022_s8  ;;  %s1483_s13 = sadd.s32 %s1349_s27, %s837_s11 }
  0x1e   : > { %p70_p1 = scmp.ne.s32.totalorder %s1333_s23, %s1329_s22  ;;  %p48_p2 = scmp.ge.s32.totalorder %s2024_s9, 2 }
  0x1f   : > { %p71_p3 = scmp.eq.s32.totalorder %s1361_s30, 0  ;;  %p76_p4 = scmp.ne.s32.totalorder %s1329_s22, %s1325_s21 }
  0x20   : > { %p77_p5 = scmp.eq.s32.totalorder %s1471_s6, 0  ;;  %s2026_s9 = smov (%p48_p2, %s2024_s9), 0 }
  0x21   : > { %1979 = sst [smem:[#allocation24_spill]] %s2026_s9  ;;  %s2028_s10 = smov (!%p48_p2, %s50_s10), %s1357_s29 }
  0x22   : > { %s838_s14 = sshll.u32 %s2026_s9, 1  ;;  %p1495_p6 = por %p71_p3, %p70_p1 }
  0x23   : > { %p52_p7 = scmp.ge.s32.totalorder %s2028_s10, 2  ;;  %s57_s16 = sadd.s32 %s838_s14, %s2022_s8 }
  0x24   : > { %s59_s17 = ssub.s32 %s1483_s13, %s57_s16  ;;  %p1501_p8 = por %p77_p5, %p76_p4 }
  0x25   : > { %s2030_s10 = smov (%p52_p7, %s2028_s10), 0  ;;  %s841_s11 = sshll.u32 %s1357_s29, 1 }
  0x26   : > { %s1981_s21 = scalar_select %p1501_p8, 1, 0 }
  0x27   : > { %1982 = sst [smem:[#allocation25_spill]] %s2030_s10  ;;  %s125_s7 = sadd.s32 1, %s1321_s20 }
  0x28   : > { %s58_s27 = ssub.s32 %s1357_s29, %s2030_s10  ;;  %s119_s5 = sadd.s32 %s1353_s28, %s841_s11 }
  0x29   : > { %s60_s14 = sor.u32 %s59_s17, %s58_s27  ;;  %s842_s16 = sshll.u32 %s2030_s10, 1 }
  0x2a   : > { %p61_p9 = scmp.eq.s32.totalorder %s60_s14, 0  ;;  %s121_s8 = sadd.s32 %s842_s16, %s2026_s9 }
  0x2b   : > { %s122_s4 = ssub.s32 %s119_s5, %s121_s8  ;;  %p135_p10 = scmp.ne.s32.totalorder %s1321_s20, %s1317_s19 }
  0x2c   : > { %s1517_s2 = scalar_select %p61_p9, %s1333_s23, %s63_s12  }
  0x2d   : > { %p123_p11 = scmp.eq.s32.totalorder %s122_s4, 0  ;;  %p136_p12 = scmp.eq.s32.totalorder %s1471_s6, 7 }
  0x2e   : > { %1983 = sst [smem:[#allocation26_spill]] %s1517_s2  ;;  %p141_p13 = scmp.ne.s32.totalorder %s1317_s19, %s1313_s18 }
  0x2f   : > { %s1984_s3 = sadd.s32 4294967294, %s1361_s30   ;;  %p1527_p1 = por %p136_p12, %p135_p10 }
  0x30   : > { %p142_p0 = scmp.eq.s32.totalorder %s1984_s3, 7  ;;  %p943_p3 = scmp.lt.s32.totalorder %s1361_s30, 8 }
  0x31   : > { %s1525_s25 = scalar_select %p123_p11, %s1321_s20, %s125_s7  }
  0x32   : > { %s1986_s27 = scalar_select %p1527_p1, 1, 0 }
  0x33   : > { %1985 = sst [smem:[#allocation27_spill]] %s1525_s25  ;;  %p1531_p2 = por %p142_p0, %p141_p13 }
  0x34   : > { %s1537_s5 = sand.u32 1, %s1333_s23   ;;  %s853_s4 = sshll.u32 %s1357_s29, 4 }
  0x35   : > { %s1987_s17 = scalar_select %p1531_p2, 1, 0 }
  0x36   : > { %s851_s8 = sshll.u32 %s1537_s5, 5  ;;  %s263_s12 = sadd.s32 %s853_s4, %s1483_s13 }
  0x37   : > { %1988 = sst [smem:[#allocation28_spill]] %s1987_s17  ;;  %s854_s11 = sshll.u32 %s263_s12, 7 }
  0x38   : > { %s256_s3 = scalar_lea.vmem [#allocation2], %s851_s8  ;;  %s1989_s0 = sld [smem:[#allocation29_spill]] }
  0x39   : > { %s266_s7 = sshll.u32 %s256_s3, 4  ;;  %p1551_p4 = pnand %p943_p3, %p1495_p6  ;;  %s1547_s7 = int_to_ptr.vmem [resolvable:$true] %s266_s7 }
  0x3a   : > { %s253_s4 = scalar_lea.sflag [#allocation3], %s1537_s5 }
  0x3b   : > { %p1069_p9 = pneg %p1551_p4 }
  0x3e   : > { %s1545_s10 = scalar_lea.hbm %s1989_s0, %s854_s11  ;;  %s1072_s15 = scalar_lea.hbm %s1989_s0, 4096 }
  0x3f   : > { %s1067_s8 = scalar_lea.hbm %s1545_s10, 512  ;;  %p1073_p6 = scmp.lt.u32.totalorder %s1545_s10, %s1989_s0 }
  0x40   : > { %p1068_p7 = scmp.ne.s32.totalorder %s1545_s10, %s1067_s8  ;;  %p1074_p12 = scmp.lt.u32.totalorder %s1072_s15, %s1067_s8 }
  0x41   : > { %p1076_p0 = scmp.lt.u32.totalorder %s1067_s8, %s1545_s10 }
  0x42   : > { %p1070_p10 = pnand %p1069_p9, %p1068_p7  ;;  %p1075_p13 = por %p1074_p12, %p1073_p6 }
  0x44   : > { %p1071_p11 = pneg %p1070_p10  ;;  %p1077_p3 = por %p1076_p0, %p1075_p13 }
  0x46   : > { %p1078_p5 = pnand %p1077_p3, %p1071_p11 }
  0x48   : > { %1081 = shalt.err (!%p1078_p5)
}
  0x49   : > { %s1082_s16 = scalar_lea.vmem %s1547_s7, 512  ;;  %s1363_s12 = smov [#allocation2]  }
  0x4a   : > { %p1083_p7 = scmp.ne.s32.totalorder %s1547_s7, %s1082_s16  ;;  %s1087_s11 = sshll.u32 %s1363_s12, 4  ;;  %s1088_s11 = int_to_ptr.vmem [resolvable:$false] %s1087_s11 }
  0x4b   : > { %s1089_s3 = scalar_lea.vmem %s1088_s11, 1024  ;;  %p1090_p1 = scmp.lt.s32.totalorder %s1547_s7, %s1088_s11 }
  0x4c   : > { %p1085_p10 = pnand %p1083_p7, %p1069_p9  ;;  %p1091_p6 = scmp.lt.s32.totalorder %s1089_s3, %s1082_s16 }
  0x4e   : > { %p1086_p2 = pneg %p1085_p10  ;;  %p1092_p12 = por %p1091_p6, %p1090_p1 }
  0x50   : > { %p1093_p13 = pnand %p1092_p12, %p1086_p2 }
  0x52   : > { %1096 = shalt.err (!%p1093_p13)
}
  0x53   : > { %s1364_s8 = smov 512   ;;  %s1365_s15 = smov 128  }
  0x54   : > { %s1366_s14 = smov 8   ;;  %p296_p1 = scmp.lt.s32.totalorder %s1361_s30, 9 }
  0x55   : > { %926 = dma.hbm_to_vmem [thread:$0]  (!%p1551_p4), %s1545_s10, 512, %s1547_s7, %s253_s4, %s1364_s8, %s1365_s15, %s1366_s14  }
  0x56   : > { %s855_s16 = sshll.u32 %s1537_s5, 3  ;;  %s857_s12 = sshll.u32 %s1357_s29, 2 }
  0x57   : > { %p1991_p2 = scmp.ge.s32.totalorder %s1361_s30, 1  ;;  %s287_s3 = sadd.s32 %s857_s12, %s1483_s13 }
  0x58   : > { %s280_s0 = scalar_lea.vmem [#allocation5], %s855_s16  ;;  %s858_s2 = sshll.u32 %s287_s3, 7 }
  0x59   : > { %p1589_p5 = pnand %p1991_p2, %p296_p1  ;;  %s291_s28 = sshll.u32 %s280_s0, 4  ;;  %s1594_s28 = int_to_ptr.vmem [resolvable:$true] %s291_s28 }
  0x5a   : > { %s289_s20 = scalar_lea.hbm %s1949_s1, %s858_s2  ;;  %s277_s17 = scalar_lea.sflag [#allocation6], %s1537_s5 }
  0x5b   : > { %s1097_s10 = scalar_lea.hbm %s289_s20, 128  ;;  %s1102_s13 = scalar_lea.hbm %s1949_s1, 1024 }
  0x5c   : > { %p1098_p11 = scmp.ne.s32.totalorder %s289_s20, %s1097_s10  ;;  %p1103_p7 = scmp.lt.u32.totalorder %s289_s20, %s1949_s1 }
  0x5d   : > { %p1104_p10 = scmp.lt.u32.totalorder %s1102_s13, %s1097_s10  ;;  %p1106_p12 = scmp.lt.u32.totalorder %s1097_s10, %s289_s20 }
  0x5e   : > { %p1100_p0 = pnand %p1098_p11, %p1069_p9 }
  0x5f   : > { %p1105_p6 = por %p1104_p10, %p1103_p7 }
  0x60   : > { %p1101_p3 = pneg %p1100_p0 }
  0x61   : > { %p1107_p13 = por %p1106_p12, %p1105_p6 }
  0x63   : > { %p1108_p1 = pnand %p1107_p13, %p1101_p3 }
  0x65   : > { %1111 = shalt.err (!%p1108_p1)
}
  0x66   : > { %s1112_s2 = scalar_lea.vmem %s1594_s28, 128  ;;  %s1367_s23 = smov [#allocation5]  }
  0x67   : > { %p1113_p2 = scmp.ne.s32.totalorder %s1594_s28, %s1112_s2  ;;  %s1117_s25 = sshll.u32 %s1367_s23, 4  ;;  %s1118_s25 = int_to_ptr.vmem [resolvable:$false] %s1117_s25 }
  0x68   : > { %s1119_s5 = scalar_lea.vmem %s1118_s25, 256  ;;  %p1120_p8 = scmp.lt.s32.totalorder %s1594_s28, %s1118_s25 }
  0x69   : > { %p1115_p11 = pnand %p1113_p2, %p1069_p9  ;;  %p1121_p7 = scmp.lt.s32.totalorder %s1119_s5, %s1112_s2 }
  0x6b   : > { %p1116_p0 = pneg %p1115_p11  ;;  %p1122_p10 = por %p1121_p7, %p1120_p8 }
  0x6d   : > { %p1123_p6 = pnand %p1122_p10, %p1116_p0 }
  0x6f   : > { %1126 = shalt.err (!%p1123_p6)
}
  0x70   : > { %929 = dma.hbm_to_vmem [thread:$0]  (!%p1551_p4), %s289_s20, 128, %s1594_s28, %s277_s17  }
  0x71   : > { %300 = sbr.rel (%p1589_p5) target bundleno = 279 (0x117), region = 28  ;;  %s302_s15 = sand.u32 (!%p1589_p5), 1, %s1329_s22  }
  0x72   : > { %s860_s14 = sshll.u32 (!%p1589_p5), %s302_s15, 5  ;;  %s303_s16 = scalar_lea.sflag (!%p1589_p5), [#allocation3], %s302_s15 }
  0x73   : > { %s1621_s12 = scalar_lea.vmem (!%p1589_p5), [#allocation2], %s860_s14  ;;  %p1993_p9 = scmp.ne.s32.totalorder (!%p1589_p5), %s1981_s21, 0 }
  0x78   : > { %1292 = dma.done.wait (%p1993_p9), %s303_s16, 512  }
  0x79   : > { %1294 = vsyncadd (%p1993_p9), %s303_s16, 4294966784  ;;  %s861_s3 = sshll.u32 %s302_s15, 3  ;;  %s312_s9 = scalar_lea.sflag [#allocation6], %s302_s15 }
  0x7a   : > { %s1627_s10 = scalar_lea.vmem [#allocation5], %s861_s3 }
  0x7b   : > { %1296 = dma.done.wait (%p1993_p9), %s312_s9, 128  }
  0x7c   : > { %1298 = vsyncadd (%p1993_p9), %s312_s9, 4294967168  ;;  %s1634_s20 = sand.u32 1, %s1317_s19   ;;  %p866_p8 = scmp.ne.s32.totalorder %s1337_s24, 0 }
  0x7d   : > { %s862_s28 = sshll.u32 %s1634_s20, 5  ;;  %s865_s17 = sshll.u32 %s1634_s20, 3  ;;  %v1368_v0 = vmov (!%p866_p8), 0.0  }
  0x7e   : > { %s1638_s11 = scalar_lea.vmem [#allocation7], %s862_s28  ;;  %s1640_s7 = scalar_lea.vmem [#allocation8], %s862_s28 }
  0x7f   : > { %s1642_s4 = scalar_lea.vmem [#allocation10], %s862_s28  ;;  %s1644_s13 = scalar_lea.vmem [#allocation11], %s865_s17  ;;  %378 = vst [vmem:[%s1638_s11] sm:$0xff] (!%p866_p8), %v1368_v0  ;;  %379 = vst [vmem:[%s1638_s11 + $0x8] sm:$0xff] (!%p866_p8), %v1368_v0 }
  0x80   : > { %377 = sbr.rel (%p866_p8) target bundleno = 135 (0x87), region = 40  ;;  %380 = vst [vmem:[%s1638_s11 + $0x10] sm:$0xff] (!%p866_p8), %v1368_v0  ;;  %381 = vst [vmem:[%s1638_s11 + $0x18] sm:$0xff] (!%p866_p8), %v1368_v0 }
  0x81   : > { %382 = vst [vmem:[%s1640_s7] sm:$0xff] (!%p866_p8), %v1368_v0  ;;  %383 = vst [vmem:[%s1640_s7 + $0x8] sm:$0xff] (!%p866_p8), %v1368_v0 }
  0x82   : > { %384 = vst [vmem:[%s1640_s7 + $0x10] sm:$0xff] (!%p866_p8), %v1368_v0  ;;  %385 = vst [vmem:[%s1640_s7 + $0x18] sm:$0xff] (!%p866_p8), %v1368_v0 }
  0x83   : > { %386 = vst [vmem:[%s1642_s4] sm:$0xff] (!%p866_p8), %v1368_v0  ;;  %387 = vst [vmem:[%s1642_s4 + $0x8] sm:$0xff] (!%p866_p8), %v1368_v0 }
  0x84   : > { %388 = vst [vmem:[%s1642_s4 + $0x10] sm:$0xff] (!%p866_p8), %v1368_v0  ;;  %389 = vst [vmem:[%s1642_s4 + $0x18] sm:$0xff] (!%p866_p8), %v1368_v0 }
  0x85   : > { %390 = vst [vmem:[%s1644_s13] sm:$0xff] (!%p866_p8), %v1368_v0 }
  0x87 PF: > { %v392_v1 = vld [vmem:[%s1621_s12] sm:$0xff]  ;;  %v867_v2 = vld [vmem:[%s1621_s12 + $0x8] sm:$0xff]  ;;  %v868_v3 = vld [vmem:[%s1621_s12 + $0x10] sm:$0xff]  ;;  %s1994_s24 = sld [smem:[#allocation20_spill]]  ;;  %s895_s21 = sshll.u32 %s1345_s26, 1 }
  0x88   : > { %v395_v4 = vmax.f32 %v392_v1, %v867_v2  ;;  %v869_v5 = vld [vmem:[%s1621_s12 + $0x18] sm:$0xff]  ;;  %v1671_v21 = vld [vmem:[%s1627_s10] sm:$0xff]  ;;  %s536_s0 = sand.u32 1, %s1471_s6   ;;  %v427_v33 = vld [vmem:[%s1640_s7] sm:$0xff]  ;;  %s580_s2 = sshll.u32 %s1640_s7, 4  ;;  %s1716_s2 = int_to_ptr.vmem [resolvable:$true] %s580_s2 }
  0x89   : > { %vm420_vm0 = vcmp.eq.s32.totalorder %v1671_v21, 0  ;;  %vm445_vm1 = vcmp.eq.s32.totalorder %v1671_v21, 1  ;;  %vm473_vm2 = vcmp.eq.s32.totalorder %v1671_v21, 2  ;;  %vm501_vm3 = vcmp.eq.s32.totalorder %v1671_v21, 3  ;;  %v873_v37 = vld [vmem:[%s1640_s7 + $0x8] sm:$0xff]  ;;  %v880_v38 = vld [vmem:[%s1640_s7 + $0x10] sm:$0xff] }
  0x8a   : > { %v398_v6 = vmax.f32 %v395_v4, %v868_v3  ;;  %v437_v24 = vsel %vm420_vm0, %v392_v1, 0.0  ;;  %v465_v25 = vsel %vm445_vm1, %v867_v2, 0.0  ;;  %v493_v27 = vsel %vm473_vm2, %v868_v3, 0.0  ;;  %v887_v39 = vld [vmem:[%s1640_s7 + $0x18] sm:$0xff]  ;;  %v422_v46 = vld [vmem:[%s1638_s11] sm:$0xff]  ;;  %v871_v48 = vld [vmem:[%s1638_s11 + $0x8] sm:$0xff] }
  0x8b   : > { %v466_v26 = vadd.f32 %v465_v25, %v437_v24  ;;  %v521_v29 = vsel %vm501_vm3, %v869_v5, 0.0  ;;  %s1995_s5 = sld [smem:[#allocation31_spill]]  ;;  %v878_v56 = vld [vmem:[%s1638_s11 + $0x10] sm:$0xff]  ;;  %v431_v58 = vld [vmem:[%s1642_s4] sm:$0xff]  ;;  %v875_v61 = vld [vmem:[%s1642_s4 + $0x8] sm:$0xff]  ;;  %s562_s14 = sshll.u32 %s1638_s11, 4  ;;  %s1780_s14 = int_to_ptr.vmem [resolvable:$true] %s562_s14 }
  0x8c   : > { %v1664_v7 = vmax.f32 %v398_v6, %v869_v5  ;;  %v885_v63 = vld [vmem:[%s1638_s11 + $0x18] sm:$0xff]  ;;  %s1996_s3 = sld [smem:[#allocation30_spill]]  ;;  %s1747_s10 = scalar_lea.sflag [#allocation9], %s536_s0 }
  0x8d   : > { %v494_v28 = vadd.f32 %v493_v27, %v466_v26  ;;  %s1685_s8 = sadd.s32 %s1994_s24, %s895_s21  ;;  %s1127_s28 = scalar_lea.vmem %s1716_s2, 512 }
  0x8e   : > { %v402_v8 = vsub.f32 %v392_v1, %v1664_v7  ;;  %v405_v9 = vsub.f32 %v867_v2, %v1664_v7  ;;  %v409_v10 = vsub.f32 %v868_v3, %v1664_v7  ;;  %v413_v11 = vsub.f32 %v869_v5, %v1664_v7  ;;  %s1694_s26 = sshll.u32 %s1685_s8, 9  ;;  %v882_v3 = vld [vmem:[%s1642_s4 + $0x10] sm:$0xff]  ;;  %p1128_p4 = scmp.ne.s32.totalorder %s1716_s2, %s1127_s28 }
  0x8f   : > { %v1699_v40 = vadd.f32 %v521_v29, %v494_v28  ;;  %p1997_p5 = scmp.ne.s32.totalorder %s1986_s27, 0  ;;  %s1369_s17 = smov [#allocation8]  }
  0x90   : > { %v403_v12 = vmul.f32 1.442695, %v402_v8  ;;  %v406_v13 = vmul.f32 1.442695, %v405_v9  ;;  %v410_v14 = vmul.f32 1.442695, %v409_v10 }
  0x91   : > { %v414_v15 = vmul.f32 1.442695, %v413_v11  ;;  %s1713_s15 = scalar_lea.hbm %s1995_s5, %s1694_s26  ;;  %p1129_p3 = pnand %p1128_p4, %p1997_p5 }
  0x92   : > { %1055 = vpow2.f32 %v403_v12  ;;  %s1737_s9 = scalar_lea.hbm %s1996_s3, %s1694_s26 }
  0x93   : > { %1057 = vpow2.f32 %v406_v13  ;;  %p1130_p12 = pneg %p1129_p3 }
  0x94   : > { %1059 = vpow2.f32 %v410_v14 }
  0x95   : > { %1061 = vpow2.f32 %v414_v15 }
  0x9c   : > { %v1056_v16 = vpop.eup %1055 }
  0x9d   : > { %v1058_v17 = vpop.eup %1057 }
  0x9e   : > { %v1060_v18 = vpop.eup %1059  ;;  %v408_v19 = vadd.f32 %v1058_v17, %v1056_v16 }
  0x9f   : > { %v1062_v20 = vpop.eup %1061 }
  0xa0   : > { %v412_v22 = vadd.f32 %v1060_v18, %v408_v19 }
  0xa2   : > { %v416_v23 = vadd.f32 %v1062_v20, %v412_v22 }
  0xa4   : > { %1063 = vrcp.f32 %v416_v23 }
  0xa5   : > { %1065 = vlog2.f32 %v416_v23 }
  0xae   : > { %v1064_v30 = vpop.eup %1063 }
  0xaf   : > { %v1066_v31 = vpop.eup %1065  ;;  %v418_v32 = vmul.f32 %v1064_v30, %v1056_v16  ;;  %v443_v34 = vmul.f32 %v1064_v30, %v1058_v17  ;;  %v471_v35 = vmul.f32 %v1064_v30, %v1060_v18  ;;  %v1691_v36 = vmul.f32 %v1064_v30, %v1062_v20 }
  0xb0   : > { %v1701_v41 = vmul.f32 0.6931472, %v1066_v31 }
  0xb1   : > { %v419_v42 = vmul.f32 %v418_v32, %v418_v32  ;;  %v444_v43 = vmul.f32 %v443_v34, %v443_v34  ;;  %v472_v44 = vmul.f32 %v471_v35, %v471_v35  ;;  %v500_v45 = vmul.f32 %v1691_v36, %v1691_v36 }
  0xb2   : > { %v421_v47 = vsub.f32 1.0, %v418_v32  ;;  %v446_v49 = vsub.f32 1.0, %v443_v34  ;;  %v474_v50 = vsub.f32 1.0, %v471_v35  ;;  %v502_v51 = vsub.f32 1.0, %v1691_v36 }
  0xb3   : > { %v429_v52 = vadd.f32 %v427_v33, %v419_v42  ;;  %v456_v53 = vadd.f32 %v873_v37, %v444_v43  ;;  %v484_v54 = vadd.f32 %v880_v38, %v472_v44  ;;  %v512_v55 = vadd.f32 %v887_v39, %v500_v45 }
  0xb4   : > { %v423_v57 = vsel %vm420_vm0, %v419_v42, 0.0  ;;  %v432_v59 = vmul.f32 %v421_v47, %v421_v47  ;;  %v449_v60 = vsel %vm445_vm1, %v444_v43, 0.0  ;;  %v460_v62 = vmul.f32 %v446_v49, %v446_v49 }
  0xb5   : > { %430 = vst [vmem:[%s1640_s7] sm:$0xff] %v429_v52  ;;  %874 = vst [vmem:[%s1640_s7 + $0x8] sm:$0xff] %v456_v53  ;;  %v425_v0 = vadd.f32 %v423_v57, %v422_v46  ;;  %v451_v1 = vadd.f32 %v871_v48, %v449_v60  ;;  %v477_v2 = vsel %vm473_vm2, %v472_v44, 0.0  ;;  %v488_v4 = vmul.f32 %v474_v50, %v474_v50 }
  0xb6   : > { %881 = vst [vmem:[%s1640_s7 + $0x10] sm:$0xff] %v484_v54  ;;  %888 = vst [vmem:[%s1640_s7 + $0x18] sm:$0xff] %v512_v55  ;;  %v433_v5 = vsel %vm420_vm0, %v432_v59, 0.0  ;;  %v461_v6 = vsel %vm445_vm1, %v460_v62, 0.0  ;;  %v479_v8 = vadd.f32 %v878_v56, %v477_v2  ;;  %v505_v9 = vsel %vm501_vm3, %v500_v45, 0.0  ;;  %s1131_s7 = sshll.u32 %s1369_s17, 4  ;;  %s1132_s7 = int_to_ptr.vmem [resolvable:$false] %s1131_s7 }
  0xb7   : > { %s1133_s24 = scalar_lea.vmem %s1132_s7, 1024  ;;  %p1134_p13 = scmp.lt.s32.totalorder %s1716_s2, %s1132_s7 }
  0xb8   : > { %p1135_p1 = scmp.lt.s32.totalorder %s1133_s24, %s1127_s28 }
  0xba   : > { %p1136_p2 = por %p1135_p1, %p1134_p13 }
  0xbc   : > { %p1137_p11 = pnand %p1136_p2, %p1130_p12 }
  0xbe   : > { %1140 = shalt.err (!%p1137_p11)
}
  0xbf   : > { %s1141_s6 = scalar_lea.hbm %s1713_s15, 512  ;;  %s1145_s23 = scalar_lea.hbm %s1995_s5, 2048 }
  0xc0   : > { %p1142_p0 = scmp.ne.s32.totalorder %s1713_s15, %s1141_s6  ;;  %p1146_p6 = scmp.lt.u32.totalorder %s1713_s15, %s1995_s5 }
  0xc1   : > { %p1147_p9 = scmp.lt.u32.totalorder %s1145_s23, %s1141_s6  ;;  %p1149_p4 = scmp.lt.u32.totalorder %s1141_s6, %s1713_s15 }
  0xc2   : > { %p1143_p7 = pnand %p1142_p0, %p1997_p5 }
  0xc3   : > { %p1148_p8 = por %p1147_p9, %p1146_p6 }
  0xc4   : > { %p1144_p10 = pneg %p1143_p7 }
  0xc5   : > { %p1150_p3 = por %p1149_p4, %p1148_p8 }
  0xc7   : > { %p1151_p12 = pnand %p1150_p3, %p1144_p10 }
  0xc9   : > { %1154 = shalt.err (!%p1151_p12)
}
  0xca   : > { %s1370_s12 = smov 128   ;;  %s1371_s28 = smov 8   ;;  %426 = vst [vmem:[%s1638_s11] sm:$0xff] %v425_v0  ;;  %v435_v10 = vadd.f32 %v433_v5, %v431_v58  ;;  %872 = vst [vmem:[%s1638_s11 + $0x8] sm:$0xff] %v451_v1  ;;  %v463_v11 = vadd.f32 %v875_v61, %v461_v6  ;;  %v489_v12 = vsel %vm473_vm2, %v488_v4, 0.0  ;;  %v507_v13 = vadd.f32 %v885_v63, %v505_v9  ;;  %v889_v15 = vld [vmem:[%s1642_s4 + $0x18] sm:$0xff]  ;;  %v527_v18 = vld [vmem:[%s1644_s13] sm:$0xff] }
  0xcb   : > { %916 = dma.vmem_to_hbm [thread:$0]  (%p1997_p5), %s1716_s2, 512, %s1713_s15, %s1747_s10, %s1370_s12, %s1370_s12, %s1371_s28   ;;  %v491_v14 = vadd.f32 %v882_v3, %v489_v12  ;;  %v516_v16 = vmul.f32 %v502_v51, %v502_v51  ;;  %v525_v17 = vadd.f32 %v1701_v41, %v1664_v7 }
  0xcc   : > { %879 = vst [vmem:[%s1638_s11 + $0x10] sm:$0xff] %v479_v8  ;;  %s1998_s17 = sld [smem:[#allocation32_spill]]  ;;  %s598_s24 = sshll.u32 %s1642_s4, 4  ;;  %436 = vst [vmem:[%s1642_s4] sm:$0xff] %v435_v10  ;;  %s1835_s24 = int_to_ptr.vmem [resolvable:$true] %s598_s24 }
  0xcd   : > { %876 = vst [vmem:[%s1642_s4 + $0x8] sm:$0xff] %v463_v11  ;;  %886 = vst [vmem:[%s1638_s11 + $0x18] sm:$0xff] %v507_v13  ;;  %s905_s6 = sshll.u32 %s1685_s8, 7  ;;  %v517_v19 = vsel %vm501_vm3, %v516_v16, 0.0  ;;  %v526_v20 = vsub.f32 %v525_v17, %v1699_v40  ;;  %s532_s0 = scalar_lea.sflag [#allocation4], %s1634_s20 }
  0xce   : > { %883 = vst [vmem:[%s1642_s4 + $0x10] sm:$0xff] %v491_v14  ;;  %s1155_s23 = scalar_lea.vmem %s1780_s14, 512 }
  0xcf   : > { %p1156_p13 = scmp.ne.s32.totalorder %s1780_s14, %s1155_s23 }
  0xd1   : > { %p1157_p1 = pnand %p1156_p13, %p1997_p5 }
  0xd2   : > { %s1793_s7 = scalar_lea.hbm %s1998_s17, %s1694_s26  ;;  %s1372_s26 = smov [#allocation7]  }
  0xd3   : > { %p1158_p2 = pneg %p1157_p1  ;;  %s1159_s25 = sshll.u32 %s1372_s26, 4  ;;  %s1160_s25 = int_to_ptr.vmem [resolvable:$false] %s1159_s25 }
  0xd4   : > { %s1161_s11 = scalar_lea.vmem %s1160_s25, 1024  ;;  %p1162_p11 = scmp.lt.s32.totalorder %s1780_s14, %s1160_s25 }
  0xd5   : > { %p1163_p0 = scmp.lt.s32.totalorder %s1161_s11, %s1155_s23 }
  0xd7   : > { %p1164_p7 = por %p1163_p0, %p1162_p11 }
  0xd9   : > { %p1165_p10 = pnand %p1164_p7, %p1158_p2 }
  0xdb   : > { %1168 = shalt.err (!%p1165_p10)
}
  0xdc   : > { %s1169_s16 = scalar_lea.hbm %s1737_s9, 512  ;;  %s1173_s26 = scalar_lea.hbm %s1996_s3, 2048 }
  0xdd   : > { %p1170_p6 = scmp.ne.s32.totalorder %s1737_s9, %s1169_s16  ;;  %p1174_p4 = scmp.lt.u32.totalorder %s1737_s9, %s1996_s3 }
  0xde   : > { %p1175_p3 = scmp.lt.u32.totalorder %s1173_s26, %s1169_s16  ;;  %p1177_p13 = scmp.lt.u32.totalorder %s1169_s16, %s1737_s9 }
  0xdf   : > { %p1171_p9 = pnand %p1170_p6, %p1997_p5 }
  0xe0   : > { %p1176_p12 = por %p1175_p3, %p1174_p4 }
  0xe1   : > { %p1172_p8 = pneg %p1171_p9 }
  0xe2   : > { %p1178_p1 = por %p1177_p13, %p1176_p12 }
  0xe4   : > { %p1179_p2 = pnand %p1178_p1, %p1172_p8 }
  0xe6   : > { %1182 = shalt.err (!%p1179_p2)
}
  0xe7   : > { %915 = dma.vmem_to_hbm [thread:$0]  (%p1997_p5), %s1780_s14, 512, %s1737_s9, %s532_s0, %s1370_s12, %s1370_s12, %s1371_s28   ;;  %v519_v7 = vadd.f32 %v889_v15, %v517_v19  ;;  %v529_v21 = vadd.f32 %v527_v18, %v526_v20 }
  0xe8   : > { %s1999_s11 = sld [smem:[#allocation33_spill]]  ;;  %s2000_s2 = sshll.u32 %s1644_s13, 4  ;;  %s1846_s2 = int_to_ptr.vmem [resolvable:$true] %s2000_s2 }
  0xe9   : > { %890 = vst [vmem:[%s1642_s4 + $0x18] sm:$0xff] %v519_v7  ;;  %530 = vst [vmem:[%s1644_s13] sm:$0xff] %v529_v21  ;;  %s1183_s14 = scalar_lea.vmem %s1835_s24, 512  ;;  %s1373_s9 = smov [#allocation10]  }
  0xea   : > { %p1184_p11 = scmp.ne.s32.totalorder %s1835_s24, %s1183_s14  ;;  %s1187_s0 = sshll.u32 %s1373_s9, 4  ;;  %s1188_s0 = int_to_ptr.vmem [resolvable:$false] %s1187_s0 }
  0xeb   : > { %s1189_s15 = scalar_lea.vmem %s1188_s0, 1024  ;;  %p1190_p10 = scmp.lt.s32.totalorder %s1835_s24, %s1188_s0 }
  0xec   : > { %p1185_p0 = pnand %p1184_p11, %p1997_p5  ;;  %p1191_p6 = scmp.lt.s32.totalorder %s1189_s15, %s1183_s14 }
  0xee   : > { %s1842_s16 = scalar_lea.hbm %s1999_s11, %s905_s6  ;;  %p1186_p7 = pneg %p1185_p0 }
  0xef   : > { %p1192_p9 = por %p1191_p6, %p1190_p10 }
  0xf1   : > { %p1193_p8 = pnand %p1192_p9, %p1186_p7 }
  0xf3   : > { %1196 = shalt.err (!%p1193_p8)
}
  0xf4   : > { %s1197_s4 = scalar_lea.hbm %s1793_s7, 512  ;;  %s1201_s6 = scalar_lea.hbm %s1998_s17, 2048 }
  0xf5   : > { %p1198_p4 = scmp.ne.s32.totalorder %s1793_s7, %s1197_s4  ;;  %p1202_p13 = scmp.lt.u32.totalorder %s1793_s7, %s1998_s17 }
  0xf6   : > { %p1203_p1 = scmp.lt.u32.totalorder %s1201_s6, %s1197_s4  ;;  %p1205_p11 = scmp.lt.u32.totalorder %s1197_s4, %s1793_s7 }
  0xf7   : > { %p1199_p3 = pnand %p1198_p4, %p1997_p5 }
  0xf8   : > { %p1204_p2 = por %p1203_p1, %p1202_p13 }
  0xf9   : > { %p1200_p12 = pneg %p1199_p3 }
  0xfa   : > { %p1206_p0 = por %p1205_p11, %p1204_p2 }
  0xfc   : > { %p1207_p7 = pnand %p1206_p0, %p1200_p12 }
  0xfe   : > { %1210 = shalt.err (!%p1207_p7)
}
  0xff   : > { %917 = dma.vmem_to_hbm [thread:$0]  (%p1997_p5), %s1835_s24, 512, %s1793_s7, %s1747_s10, %s1370_s12, %s1370_s12, %s1371_s28  }
 0x100   : > { %s547_s21 = scalar_lea.sflag [#allocation12], %s1634_s20  ;;  %s1211_s23 = scalar_lea.vmem %s1846_s2, 128 }
 0x101   : > { %p1212_p10 = scmp.ne.s32.totalorder %s1846_s2, %s1211_s23  ;;  %s1374_s14 = smov [#allocation11]  }
 0x102   : > { %s1215_s9 = sshll.u32 %s1374_s14, 4  ;;  %s1216_s9 = int_to_ptr.vmem [resolvable:$false] %s1215_s9 }
 0x103   : > { %p1213_p6 = pnand %p1212_p10, %p1997_p5  ;;  %s1217_s0 = scalar_lea.vmem %s1216_s9, 256 }
 0x104   : > { %p1218_p8 = scmp.lt.s32.totalorder %s1846_s2, %s1216_s9  ;;  %p1219_p4 = scmp.lt.s32.totalorder %s1217_s0, %s1211_s23 }
 0x105   : > { %p1214_p9 = pneg %p1213_p6 }
 0x106   : > { %p1220_p3 = por %p1219_p4, %p1218_p8 }
 0x108   : > { %p1221_p12 = pnand %p1220_p3, %p1214_p9 }
 0x10a   : > { %1224 = shalt.err (!%p1221_p12)
}
 0x10b   : > { %s1225_s20 = scalar_lea.hbm %s1842_s16, 128  ;;  %s1229_s28 = scalar_lea.hbm %s1999_s11, 512 }
 0x10c   : > { %p1226_p13 = scmp.ne.s32.totalorder %s1842_s16, %s1225_s20  ;;  %p1230_p11 = scmp.lt.u32.totalorder %s1842_s16, %s1999_s11 }
 0x10d   : > { %p1231_p0 = scmp.lt.u32.totalorder %s1229_s28, %s1225_s20  ;;  %p1233_p10 = scmp.lt.u32.totalorder %s1225_s20, %s1842_s16 }
 0x10e   : > { %p1227_p1 = pnand %p1226_p13, %p1997_p5 }
 0x10f   : > { %p1232_p7 = por %p1231_p0, %p1230_p11 }
 0x110   : > { %p1228_p2 = pneg %p1227_p1 }
 0x111   : > { %p1234_p6 = por %p1233_p10, %p1232_p7 }
 0x113   : > { %p1235_p9 = pnand %p1234_p6, %p1228_p2 }
 0x115   : > { %1238 = shalt.err (!%p1235_p9)
}
 0x116   : > { %918 = dma.vmem_to_hbm [thread:$0]  (%p1997_p5), %s1846_s2, 128, %s1842_s16, %s547_s21  }
 0x117 PF: > { %s2001_s15 = sld [smem:[#allocation28_spill]]  ;;  %p944_p8 = scmp.ge.s32.totalorder %s1361_s30, 2 }
 0x118   : > { %s628_s4 = sand.u32 1, %s1313_s18  }
 0x119   : > { %s629_s13 = scalar_lea.sflag [#allocation4], %s628_s4 }
 0x11d   : > { %p2002_p4 = scmp.ne.s32.totalorder %s2001_s15, 0 }
 0x11f   : > { %p931_p3 = pnand %p944_p8, %p2002_p4 }
 0x121   : > { %1300 = dma.done.wait (!%p931_p3), %s629_s13, 512  }
 0x122   : > { %1302 = vsyncadd (!%p931_p3), %s629_s13, 4294966784  ;;  %s2003_s8 = sadd.s32 4294967294, %s1361_s30  }
 0x123   : > { %s637_s6 = sand.u32 1, %s2003_s8  }
 0x124   : > { %s638_s26 = scalar_lea.sflag [#allocation9], %s637_s6 }
 0x125   : > { %1304 = dma.done.wait (!%p931_p3), %s638_s26, 1024  }
 0x126   : > { %1306 = vsyncadd (!%p931_p3), %s638_s26, 4294966272  ;;  %s656_s27 = scalar_lea.sflag [#allocation12], %s628_s4 }
 0x127   : > { %1308 = dma.done.wait (!%p931_p3), %s656_s27, 128  }
 0x128   : > { %1310 = vsyncadd (!%p931_p3), %s656_s27, 4294967168  ;;  %s31_s30 = sadd.s32 1, %s1361_s30   ;;  %s2005_s2 = sld [smem:[#allocation18_spill]] }
 0x129   : > { %p1904_p5 = scmp.ge.s32.totalorder %s31_s30, 10   ;;  %s2006_s20 = sld [smem:[#allocation27_spill]] }
 0x12a   : > { %s2007_s25 = sld [smem:[#allocation19_spill]]  ;;  %s2008_s23 = sld [smem:[#allocation26_spill]] }
 0x12b   : > { %s2009_s24 = sld [smem:[#allocation21_spill]]  ;;  %s2010_s14 = sld [smem:[#allocation22_spill]] }
 0x12c   : > { %s2011_s27 = sld [smem:[#allocation23_spill]]  ;;  %s2012_s28 = sld [smem:[#allocation24_spill]] }
 0x12d   : > { %s2013_s9 = sld [smem:[#allocation25_spill]]  ;;  %s2014_s18 = smov %s1317_s19 }
 0x12e   : > { %s2015_s19 = smov %s2005_s2  ;;  %s2016_s21 = smov %s1329_s22 }
 0x12f   : > { %s2019_s26 = smov %s1357_s29  ;;  %30 = sbr.rel (!%p1904_p5) target bundleno = 22 (0x16), region = 151 }
 0x130   : > { %s2017_s22 = smov %s2007_s25 }
 0x131   : > { %s2018_s25 = smov %s2010_s14 }
 0x133   : > { %s2020_s29 = smov %s2013_s9 }
 0x136   :  { %661 = vsyncpa [#allocation3], 1 }
 0x137   :  { %663 = vsyncpa [#allocation3 + $0x1], 1 }
 0x138   :  { %664 = vsyncpa [#allocation6], 1 }
 0x139   :  { %666 = vsyncpa [#allocation6 + $0x1], 1 }
 0x13a   :  { %667 = vsyncpa [#allocation4], 1 }
 0x13b   :  { %669 = vsyncpa [#allocation4 + $0x1], 1 }
 0x13c   :  { %670 = vsyncpa [#allocation9], 1 }
 0x13d   :  { %672 = vsyncpa [#allocation9 + $0x1], 1 }
 0x13e   :  { %673 = vsyncpa [#allocation12], 1 }
 0x13f   :  { %675 = vsyncpa [#allocation12 + $0x1], 1 }

</bundles_post_ra>
